<compile_context>
chip_gen: v5e
topology: v5e:2x2
jax: 0.10.0
libtpu: 0.0.40
codegen_flags: <defaults>
</compile_context>

<pallas_src>
import math
from functools import partial

import numpy as np
import jax
import jax.numpy as jnp
from jax.experimental import pallas as pl
from jax.experimental.pallas import tpu as pltpu


# MXU operand dtype (accumulation is always f32). Set to jnp.float32 for
# bit-faithful f32 matmuls; bf16 is the TPU-native MXU path.
MXU_DTYPE = jnp.bfloat16
VMEM_LIMIT_BYTES = 32 * 1024 * 1024   # safe on v5e/v6e/v7x, keeps 2x buffering


def _round_up(x, m):
    return (x + m - 1) // m * m


def _pick_batch_tile(B, lanes_per_image, C):
    """Largest divisor of B whose fused lane extent keeps the per-step VMEM
    working set (activations + FFN intermediates + double-buffered I/O,
    ~28 f32 rows of C channels per lane) well under v7x's 64 MiB VMEM."""
    budget_bytes = 8 * 1024 * 1024
    per_image = 28 * max(C, 8) * 4 * lanes_per_image
    bt = max(1, min(B, budget_bytes // max(per_image, 1)))
    while B % bt:
        bt -= 1
    return bt


# ---------------------------------------------------------------------------
# Plain-JAX parameter transforms (tiny, O(n*C))
# ---------------------------------------------------------------------------
def linspace_weights(p1, p2, n):
    """LinSpace.forward(): out[i] = p1*(i/(n-1)) + p2*(1 - i/(n-1)).
    lb/ub are None everywhere in this module -> soft_clip is identity."""
    denom = max(n - 1, 1)   # PyTorch itself is ill-defined for n == 1
    w = jnp.arange(n, dtype=jnp.float32) / denom
    w = w.reshape((n,) + (1,) * p1.ndim)
    return p1[None] * w + p2[None] * (1.0 - w)


def freq_filter_scale(p):
    """FreqPassFilter.get_filter(): p (n, C) -> (n, C)."""
    s1 = jnp.cumsum(jax.nn.softmax(p, axis=-1), axis=-1)
    s2 = jnp.cumsum(jax.nn.softmax(p[:, ::-1], axis=-1), axis=-1)
    s = jnp.minimum(s1, s2[:, ::-1])
    return s / jnp.sum(s, axis=-1, keepdims=True)


# ---------------------------------------------------------------------------
# Kernel 1: fused FreqCondBlock stack (all `depth` blocks in one pallas_call)
#   depthwise 3x3 conv (taps via XLU lane rolls) -> filter scale ->
#   LayerNorm(C) -> FFN ( (W1;W2) x -> GLU -> W3^T ) -> residual -> re-mask.
# Grid: (n_freq, B_tiles, depth); activation block stays resident in o_ref
# across the (arbitrary) depth axis.
# ---------------------------------------------------------------------------
def _block_kernel(x_ref, mask_ref, vec_ref, w12_ref, w3t_ref, o_ref,
                  *, Wp, eps, C):
    d = pl.program_id(2)

    @pl.when(d == 0)
    def _():
        o_ref[...] = x_ref[...]            # load activations once per (f, b)

    x = o_ref[0]                           # (C, LT) f32, pad ring == 0
    vec = vec_ref[0, 0]                    # (C, 12): 0..8 conv taps, 9 scale,
    LT = x.shape[-1]                       #          10 gamma, 11 beta

    # --- 3x3 depthwise conv: 9 taps via static XLU lane rotations of the
    #     flattened padded images (interior lanes never read wrapped / other-
    #     image lanes; non-interior lanes are re-masked below). ---
    acc = x * vec[:, 4:5]                  # center tap
    for kh in range(3):
        for kw in range(3):
            if kh == 1 and kw == 1:
                continue
            off = (kh - 1) * Wp + (kw - 1)
            tap = pltpu.roll(x, (-off) % LT, axis=1)
            acc = acc + tap * vec[:, kh * 3 + kw:kh * 3 + kw + 1]

    # --- FreqPassFilter scale + FreqCondLayerNorm over channels.
    #     torch .var() is unbiased -> divide by (C - 1). All f32 (v5e VPU). ---
    y = acc * vec[:, 9:10]
    mu = jnp.mean(y, axis=0, keepdims=True)
    dev = y - mu
    var = jnp.sum(dev * dev, axis=0, keepdims=True) * (1.0 / (C - 1))
    ln = dev * jax.lax.rsqrt(var + eps) * vec[:, 10:11] + vec[:, 11:12]

    # --- FreqCondFFN: one fused (4C, C) matmul for W1/W2 (weights pre-cast to
    #     bf16 in the wrapper), GLU gate, project back. f32 accumulation. ---
    lnc = ln.astype(MXU_DTYPE)
    x12 = jnp.dot(w12_ref[0, 0], lnc, preferred_element_type=jnp.float32)
    x1 = x12[:2 * C]
    x2 = x12[2 * C:]
    h = (x1 * (x2 * jax.nn.sigmoid(x2))).astype(MXU_DTYPE)
    y3 = jnp.dot(w3t_ref[0, 0], h, preferred_element_type=jnp.float32)

    # --- residual add; keep pad ring / lane padding exactly zero for the
    #     next block's conv. ---
    o_ref[0] = (x + y3) * mask_ref[...]


def _freq_blocks(xp, mask, vec, w12, w3t, *, C, Wp, lanes_tile, eps):
    nf, _, LT = xp.shape
    depth = vec.shape[0]
    nb = LT // lanes_tile
    return pl.pallas_call(
        partial(_block_kernel, Wp=Wp, eps=eps, C=C),
        out_shape=jax.ShapeDtypeStruct(xp.shape, jnp.float32),
        grid_spec=pltpu.PrefetchScalarGridSpec(
            num_scalar_prefetch=0,
            grid=(nf, nb, depth),
            in_specs=[
                pl.BlockSpec((1, C, lanes_tile), lambda f, b, d: (f, 0, b)),
                pl.BlockSpec((1, lanes_tile), lambda f, b, d: (0, 0)),
                pl.BlockSpec((1, 1, C, 12), lambda f, b, d: (d, f, 0, 0)),
                pl.BlockSpec((1, 1, 4 * C, C), lambda f, b, d: (d, f, 0, 0)),
                pl.BlockSpec((1, 1, C, 2 * C), lambda f, b, d: (d, f, 0, 0)),
            ],
            out_specs=pl.BlockSpec((1, C, lanes_tile),
                                   lambda f, b, d: (f, 0, b)),
        ),
        compiler_params=pltpu.CompilerParams(
            dimension_semantics=("parallel", "parallel", "arbitrary"),
            vmem_limit_bytes=VMEM_LIMIT_BYTES),
        input_output_aliases={0: 0},       # reuse the activation HBM buffer
    )(xp, mask, vec, w12, w3t)


# ---------------------------------------------------------------------------
# Kernel 2: fused downsample (2x2 / stride-2 conv as 4 tap-matmuls) + final
# FreqCondLayerNorm. Grid: (n_freq, M_tiles), M = B*H2*W2 on the lanes.
# ---------------------------------------------------------------------------
def _down_ln_kernel(t0_ref, t1_ref, t2_ref, t3_ref, w_ref, gb_ref, o_ref,
                    *, eps, nout):
    y = jnp.dot(w_ref[0, 0], t0_ref[0], preferred_element_type=jnp.float32)
    y = y + jnp.dot(w_ref[0, 1], t1_ref[0], preferred_element_type=jnp.float32)
    y = y + jnp.dot(w_ref[0, 2], t2_ref[0], preferred_element_type=jnp.float32)
    y = y + jnp.dot(w_ref[0, 3], t3_ref[0], preferred_element_type=jnp.float32)
    mu = jnp.mean(y, axis=0, keepdims=True)
    dev = y - mu
    var = jnp.sum(dev * dev, axis=0, keepdims=True) * (1.0 / (nout - 1))
    gb = gb_ref[0]                                       # (Cout, 2) f32
    o_ref[0] = dev * jax.lax.rsqrt(var + eps) * gb[:, 0:1] + gb[:, 1:2]


# ---------------------------------------------------------------------------
# Stage wrapper
# ---------------------------------------------------------------------------
def freq_cond_stage(x, params, *, n, eps=1e-5):
    """FreqCondStage.forward. x: (B, n, C, H, W) f32 -> (B, n, Cout, H2, W2)."""
    B, nf, C, H, W = x.shape
    assert nf == n
    depth = len(params["blocks"])
    Hp, Wp = H + 2, W + 2
    Lp = Hp * Wp
    Lp_pad = _round_up(Lp, 128)                          # lane-dense images
    Bt = _pick_batch_tile(B, Lp_pad, C)
    lanes_tile = Bt * Lp_pad

    # Padded, frequency-major, lane-dense activation layout (n, C, B*Lp_pad).
    xt = jnp.transpose(x, (1, 2, 0, 3, 4)).astype(jnp.float32)   # (n,C,B,H,W)
    xp = jnp.pad(xt, ((0, 0), (0, 0), (0, 0), (1, 1), (1, 1)))   # (n,C,B,Hp,Wp)
    xp = xp.reshape(n, C, B, Lp)
    xp = jnp.pad(xp, ((0, 0), (0, 0), (0, 0), (0, Lp_pad - Lp)))
    xp = xp.reshape(n, C, B * Lp_pad)

    # Interior mask for one lane tile (compile-time constant; 1 inside, 0 on
    # the 1-pixel pad ring and on the Lp->Lp_pad lane padding).
    m2 = np.zeros((Hp, Wp), np.float32)
    m2[1:H + 1, 1:W + 1] = 1.0
    m1 = np.zeros((Lp_pad,), np.float32)
    m1[:Lp] = m2.reshape(-1)
    mask = jnp.asarray(np.tile(m1, Bt)[None, :])                  # (1, lanes)

    if depth > 0:
        vec_l, w12_l, w3t_l = [], [], []
        for bp in params["blocks"]:
            wc = linspace_weights(bp["conv_p1"], bp["conv_p2"], n)     # (n,C,9)
            scale = freq_filter_scale(bp["filt"])[:, :, None]          # (n,C,1)
            gb = linspace_weights(bp["ln_p1"], bp["ln_p2"], n)         # (n,2,C)
            vec_l.append(jnp.concatenate(
                [wc, scale, gb[:, 0][:, :, None], gb[:, 1][:, :, None]],
                axis=-1))                                              # (n,C,12)
            wf = linspace_weights(bp["ffn_p1"], bp["ffn_p2"], n)       # (n,3,2C,C)
            w12_l.append(jnp.concatenate([wf[:, 0], wf[:, 1]], axis=1))  # (n,4C,C)
            w3t_l.append(jnp.swapaxes(wf[:, 2], 1, 2))                 # (n,C,2C)
        vec = jnp.stack(vec_l, 0)                                      # f32
        w12 = jnp.stack(w12_l, 0).astype(MXU_DTYPE)                    # bf16
        w3t = jnp.stack(w3t_l, 0).astype(MXU_DTYPE)                    # bf16
        xp = _freq_blocks(xp, mask, vec, w12, w3t, C=C, Wp=Wp,
                          lanes_tile=lanes_tile, eps=eps)

    # ---- downsample (2x2 / stride-2 conv) + final LayerNorm ---------------
    # Four stride-2 tap views (simple strided slices, no big transpose), each
    # lane-dense over B*H2*W2 and pre-cast to bf16.
    xs = xp.reshape(n, C, B, Lp_pad)[:, :, :, :Lp].reshape(n, C, B, Hp, Wp)
    xi = xs[:, :, :, 1:H + 1, 1:W + 1]                               # interior
    H2 = (H - 2) // 2 + 1
    W2 = (W - 2) // 2 + 1
    M = B * H2 * W2
    TM = min(2048, _round_up(M, 128))
    Mp = _round_up(M, TM)
    taps = []
    for kh in range(2):
        for kw in range(2):
            t = xi[:, :, :, kh:kh + 2 * H2:2, kw:kw + 2 * W2:2]      # (n,C,B,H2,W2)
            t = t.reshape(n, C, M).astype(MXU_DTYPE)
            if Mp != M:
                t = jnp.pad(t, ((0, 0), (0, 0), (0, Mp - M)))
            taps.append(t)

    wd = linspace_weights(params["down_p1"], params["down_p2"], n)   # (n,Cout,4C)
    Cout = wd.shape[1]
    # unfold ordering: col index = c*4 + kh*2 + kw -> per-tap (Cout, C) slabs
    w4 = jnp.transpose(wd.reshape(n, Cout, C, 4), (0, 3, 1, 2)).astype(MXU_DTYPE)
    gbo = linspace_weights(params["ln_p1"], params["ln_p2"], n)      # (n,2,Cout)
    gb = jnp.stack([gbo[:, 0], gbo[:, 1]], axis=-1)                  # (n,Cout,2)

    y = pl.pallas_call(
        partial(_down_ln_kernel, eps=eps, nout=Cout),
        out_shape=jax.ShapeDtypeStruct((n, Cout, Mp), jnp.float32),
        grid_spec=pltpu.PrefetchScalarGridSpec(
            num_scalar_prefetch=0,
            grid=(n, Mp // TM),
            in_specs=[pl.BlockSpec((1, C, TM), lambda f, m: (f, 0, m))] * 4 + [
                pl.BlockSpec((1, 4, Cout, C), lambda f, m: (f, 0, 0, 0)),
                pl.BlockSpec((1, Cout, 2), lambda f, m: (f, 0, 0)),
            ],
            out_specs=pl.BlockSpec((1, Cout, TM), lambda f, m: (f, 0, m)),
        ),
        compiler_params=pltpu.CompilerParams(
            dimension_semantics=("parallel", "parallel"),
            vmem_limit_bytes=VMEM_LIMIT_BYTES),
    )(*taps, w4, gb)

    y = y[:, :, :M].reshape(n, Cout, B, H2, W2)
    return jnp.transpose(y, (2, 0, 1, 3, 4))                         # (B,n,Cout,H2,W2)


# ---------------------------------------------------------------------------
# Pure-JAX f32 reference (mirrors the PyTorch module op-for-op)
# ---------------------------------------------------------------------------
def _stage_reference(x, params, *, n, eps=1e-5):
    B, nf, C, H, W = x.shape
    h = x.astype(jnp.float32)
    for bp in params["blocks"]:
        wc = linspace_weights(bp["conv_p1"], bp["conv_p2"], n)       # (n,C,9)
        scale = freq_filter_scale(bp["filt"])                        # (n,C)
        gb = linspace_weights(bp["ln_p1"], bp["ln_p2"], n)           # (n,2,C)
        wf = linspace_weights(bp["ffn_p1"], bp["ffn_p2"], n)         # (n,3,2C,C)
        hp = jnp.pad(h, ((0, 0), (0, 0), (0, 0), (1, 1), (1, 1)))
        conv = jnp.zeros_like(h)
        for kh in range(3):
            for kw in range(3):
                patch = hp[:, :, :, kh:kh + H, kw:kw + W]
                conv = conv + patch * wc[None, :, :, kh * 3 + kw, None, None]
        y = conv * scale[None, :, :, None, None]
        mu = jnp.mean(y, axis=2, keepdims=True)
        var = jnp.var(y, axis=2, keepdims=True, ddof=1)
        y = (y - mu) / jnp.sqrt(var + eps)
        y = y * gb[None, :, 0, :, None, None] + gb[None, :, 1, :, None, None]
        w1, w2, w3 = wf[:, 0], wf[:, 1], wf[:, 2]
        yp = jnp.transpose(y, (0, 1, 3, 4, 2))
        x1 = jnp.einsum('bnhwc,njc->bnhwj', yp, w1)
        x2 = jnp.einsum('bnhwc,njc->bnhwj', yp, w2)
        g = x1 * (x2 * jax.nn.sigmoid(x2))
        out = jnp.einsum('bnhwj,njc->bnhwc', g, w3)
        h = h + jnp.transpose(out, (0, 1, 4, 2, 3))
    wd = linspace_weights(params["down_p1"], params["down_p2"], n)   # (n,Cout,4C)
    Cout = wd.shape[1]
    H2 = (H - 2) // 2 + 1
    W2 = (W - 2) // 2 + 1
    wd4 = wd.reshape(n, Cout, C, 2, 2)
    y = jnp.zeros((B, n, Cout, H2, W2), jnp.float32)
    for kh in range(2):
        for kw in range(2):
            patch = h[:, :, :, kh:kh + 2 * H2:2, kw:kw + 2 * W2:2]
            y = y + jnp.einsum('bnchw,noc->bnohw', patch, wd4[:, :, :, kh, kw])
    gb = linspace_weights(params["ln_p1"], params["ln_p2"], n)       # (n,2,Cout)
    mu = jnp.mean(y, axis=2, keepdims=True)
    var = jnp.var(y, axis=2, keepdims=True, ddof=1)
    y = (y - mu) / jnp.sqrt(var + eps)
    return y * gb[None, :, 0, :, None, None] + gb[None, :, 1, :, None, None]


# ---------------------------------------------------------------------------
# Deterministic parameter init (shapes from the module's __init__)
# ---------------------------------------------------------------------------
def init_stage_params(key, *, in_ch, out_ch, depth, n):
    keys = iter(jax.random.split(key, 16 + 8 * depth))

    def tn(shape, std):
        return (jax.random.truncated_normal(next(keys), -2.0, 2.0, shape)
                * std).astype(jnp.float32)

    blocks = []
    for _ in range(depth):
        blocks.append(dict(
            # GroupFreqCondConv2d(groups=ch): per-channel LinSpace((1,9)) stacked
            conv_p1=tn((in_ch, 9), 2.0 / math.sqrt(9)),
            conv_p2=tn((in_ch, 9), 2.0 / math.sqrt(9)),
            # FreqPassFilter.x: torch inits zeros; nonzero here to exercise it
            filt=tn((n, in_ch), 0.5),
            ln_p1=tn((2, in_ch), 2.0 / math.sqrt(in_ch)),
            ln_p2=tn((2, in_ch), 2.0 / math.sqrt(in_ch)),
            ffn_p1=tn((3, 2 * in_ch, in_ch), 2.0 / math.sqrt(in_ch)),
            ffn_p2=tn((3, 2 * in_ch, in_ch), 2.0 / math.sqrt(in_ch)),
        ))
    return dict(
        blocks=blocks,
        down_p1=tn((out_ch, in_ch * 4), 2.0 / math.sqrt(in_ch * 4)),
        down_p2=tn((out_ch, in_ch * 4), 2.0 / math.sqrt(in_ch * 4)),
        ln_p1=tn((2, out_ch), 2.0 / math.sqrt(out_ch)),
        ln_p2=tn((2, out_ch), 2.0 / math.sqrt(out_ch)),
    )


if __name__ == "__main__":
    # Small config consistent with FreqCondStage(in_ch, out_ch, depth, n)
    B, n, in_ch, out_ch, depth, H, W = 2, 4, 8, 16, 2, 16, 16
    key = jax.random.PRNGKey(0)
    pkey, xkey = jax.random.split(key)
    params = init_stage_params(pkey, in_ch=in_ch, out_ch=out_ch, depth=depth, n=n)
    x = jax.random.normal(xkey, (B, n, in_ch, H, W), dtype=jnp.float32)

    fwd = jax.jit(partial(freq_cond_stage, n=n))
    y = jax.block_until_ready(fwd(x, params))
    assert y.shape == (B, n, out_ch, H // 2, W // 2), y.shape
    assert bool(jnp.all(jnp.isfinite(y)))

    # Structural check vs. a pure-JAX f32 reference. Loose tolerance: the
    # kernels use bf16 MXU operands (f32 accumulation); structural errors
    # (e.g. wrong tap offsets) would be O(1).
    y_ref = jax.block_until_ready(jax.jit(partial(_stage_reference, n=n))(x, params))
    err = float(jnp.max(jnp.abs(y - y_ref)))
    assert err < 0.25, f"max abs error vs reference: {err}"

    print("KERNEL_OK")
</pallas_src>

<mosaic_0001>
module attributes {stable_mosaic.version = 11 : i64} {
  func.func @_block_kernel(%arg0: i32, %arg1: i32, %arg2: i32, %arg3: memref<1x8x768xf32, #tpu.memory_space<vmem>>, %arg4: memref<1x768xf32, #tpu.memory_space<vmem>>, %arg5: memref<1x1x8x12xf32, #tpu.memory_space<vmem>>, %arg6: memref<1x1x32x8xbf16, #tpu.memory_space<vmem>>, %arg7: memref<1x1x8x16xbf16, #tpu.memory_space<vmem>>, %arg8: memref<1x8x768xf32, #tpu.memory_space<vmem>>) attributes {dimension_semantics = [#tpu.dimension_semantics<parallel>, #tpu.dimension_semantics<parallel>, #tpu.dimension_semantics<arbitrary>], iteration_bounds = array<i64: 4, 1, 2>, scalar_prefetch = 0 : i64, scratch_operands = 0 : i64, tpu.core_type = #tpu.core_type<tc>, window_params = [{transform_indices = @transform_0, window_bounds = array<i64: 1, 8, 768>}, {pipeline_mode = #tpu.pipeline_mode<synchronous>, transform_indices = @transform_1, window_bounds = array<i64: 1, 768>}, {transform_indices = @transform_2, window_bounds = array<i64: 1, 1, 8, 12>}, {transform_indices = @transform_3, window_bounds = array<i64: 1, 1, 32, 8>}, {transform_indices = @transform_4, window_bounds = array<i64: 1, 1, 8, 16>}, {transform_indices = @transform_5, window_bounds = array<i64: 1, 8, 768>}]} {
    %c0_i32 = arith.constant 0 : i32
    %0 = arith.cmpi eq, %arg2, %c0_i32 : i32
    %1 = arith.extui %0 : i1 to i32
    %c0_i32_0 = arith.constant 0 : i32
    %2 = arith.cmpi ne, %1, %c0_i32_0 : i32
    scf.if %2 {
      %c0_27 = arith.constant 0 : index
      %c0_28 = arith.constant 0 : index
      %c0_29 = arith.constant 0 : index
      %99 = vector.load %arg3[%c0_27, %c0_28, %c0_29] : memref<1x8x768xf32, #tpu.memory_space<vmem>>, vector<1x8x768xf32>
      %c0_30 = arith.constant 0 : index
      %c0_31 = arith.constant 0 : index
      %c0_32 = arith.constant 0 : index
      %100 = vector.load %arg8[%c0_30, %c0_31, %c0_32] : memref<1x8x768xf32, #tpu.memory_space<vmem>>, vector<1x8x768xf32>
      tpu.vector_store %arg8[%c0_30, %c0_31, %c0_32], %99 {strides = array<i32>} : memref<1x8x768xf32, #tpu.memory_space<vmem>>, vector<1x8x768xf32>,
    } else {
    }
    %c0 = arith.constant 0 : index
    %c0_1 = arith.constant 0 : index
    %c0_2 = arith.constant 0 : index
    %3 = vector.load %arg8[%c0, %c0_1, %c0_2] : memref<1x8x768xf32, #tpu.memory_space<vmem>>, vector<1x8x768xf32>
    %4 = vector.shape_cast %3 : vector<1x8x768xf32> to vector<8x768xf32>
    %c0_3 = arith.constant 0 : index
    %c0_4 = arith.constant 0 : index
    %c0_5 = arith.constant 0 : index
    %c0_6 = arith.constant 0 : index
    %5 = vector.load %arg5[%c0_3, %c0_4, %c0_5, %c0_6] : memref<1x1x8x12xf32, #tpu.memory_space<vmem>>, vector<1x1x8x12xf32>
    %6 = vector.shape_cast %5 : vector<1x1x8x12xf32> to vector<8x12xf32>
    %7 = vector.extract_strided_slice %6 {offsets = [0, 4], sizes = [8, 1], strides = [1, 1]} : vector<8x12xf32> to vector<8x1xf32>
    %8 = vector.broadcast %7 : vector<8x1xf32> to vector<8x768xf32>
    %9 = arith.mulf %4, %8 : vector<8x768xf32>
    %c19_i32 = arith.constant 19 : i32
    %10 = tpu.dynamic_rotate %4 by %c19_i32 dim 1 : vector<8x768xf32>, i32 -> vector<8x768xf32>
    %11 = vector.extract_strided_slice %6 {offsets = [0, 0], sizes = [8, 1], strides = [1, 1]} : vector<8x12xf32> to vector<8x1xf32>
    %12 = vector.broadcast %11 : vector<8x1xf32> to vector<8x768xf32>
    %13 = arith.mulf %10, %12 : vector<8x768xf32>
    %14 = arith.addf %9, %13 : vector<8x768xf32>
    %c18_i32 = arith.constant 18 : i32
    %15 = tpu.dynamic_rotate %4 by %c18_i32 dim 1 : vector<8x768xf32>, i32 -> vector<8x768xf32>
    %16 = vector.extract_strided_slice %6 {offsets = [0, 1], sizes = [8, 1], strides = [1, 1]} : vector<8x12xf32> to vector<8x1xf32>
    %17 = vector.broadcast %16 : vector<8x1xf32> to vector<8x768xf32>
    %18 = arith.mulf %15, %17 : vector<8x768xf32>
    %19 = arith.addf %14, %18 : vector<8x768xf32>
    %c17_i32 = arith.constant 17 : i32
    %20 = tpu.dynamic_rotate %4 by %c17_i32 dim 1 : vector<8x768xf32>, i32 -> vector<8x768xf32>
    %21 = vector.extract_strided_slice %6 {offsets = [0, 2], sizes = [8, 1], strides = [1, 1]} : vector<8x12xf32> to vector<8x1xf32>
    %22 = vector.broadcast %21 : vector<8x1xf32> to vector<8x768xf32>
    %23 = arith.mulf %20, %22 : vector<8x768xf32>
    %24 = arith.addf %19, %23 : vector<8x768xf32>
    %c1_i32 = arith.constant 1 : i32
    %25 = tpu.dynamic_rotate %4 by %c1_i32 dim 1 : vector<8x768xf32>, i32 -> vector<8x768xf32>
    %26 = vector.extract_strided_slice %6 {offsets = [0, 3], sizes = [8, 1], strides = [1, 1]} : vector<8x12xf32> to vector<8x1xf32>
    %27 = vector.broadcast %26 : vector<8x1xf32> to vector<8x768xf32>
    %28 = arith.mulf %25, %27 : vector<8x768xf32>
    %29 = arith.addf %24, %28 : vector<8x768xf32>
    %c767_i32 = arith.constant 767 : i32
    %30 = tpu.dynamic_rotate %4 by %c767_i32 dim 1 : vector<8x768xf32>, i32 -> vector<8x768xf32>
    %31 = vector.extract_strided_slice %6 {offsets = [0, 5], sizes = [8, 1], strides = [1, 1]} : vector<8x12xf32> to vector<8x1xf32>
    %32 = vector.broadcast %31 : vector<8x1xf32> to vector<8x768xf32>
    %33 = arith.mulf %30, %32 : vector<8x768xf32>
    %34 = arith.addf %29, %33 : vector<8x768xf32>
    %c751_i32 = arith.constant 751 : i32
    %35 = tpu.dynamic_rotate %4 by %c751_i32 dim 1 : vector<8x768xf32>, i32 -> vector<8x768xf32>
    %36 = vector.extract_strided_slice %6 {offsets = [0, 6], sizes = [8, 1], strides = [1, 1]} : vector<8x12xf32> to vector<8x1xf32>
    %37 = vector.broadcast %36 : vector<8x1xf32> to vector<8x768xf32>
    %38 = arith.mulf %35, %37 : vector<8x768xf32>
    %39 = arith.addf %34, %38 : vector<8x768xf32>
    %c750_i32 = arith.constant 750 : i32
    %40 = tpu.dynamic_rotate %4 by %c750_i32 dim 1 : vector<8x768xf32>, i32 -> vector<8x768xf32>
    %41 = vector.extract_strided_slice %6 {offsets = [0, 7], sizes = [8, 1], strides = [1, 1]} : vector<8x12xf32> to vector<8x1xf32>
    %42 = vector.broadcast %41 : vector<8x1xf32> to vector<8x768xf32>
    %43 = arith.mulf %40, %42 : vector<8x768xf32>
    %44 = arith.addf %39, %43 : vector<8x768xf32>
    %c749_i32 = arith.constant 749 : i32
    %45 = tpu.dynamic_rotate %4 by %c749_i32 dim 1 : vector<8x768xf32>, i32 -> vector<8x768xf32>
    %46 = vector.extract_strided_slice %6 {offsets = [0, 8], sizes = [8, 1], strides = [1, 1]} : vector<8x12xf32> to vector<8x1xf32>
    %47 = vector.broadcast %46 : vector<8x1xf32> to vector<8x768xf32>
    %48 = arith.mulf %45, %47 : vector<8x768xf32>
    %49 = arith.addf %44, %48 : vector<8x768xf32>
    %50 = vector.extract_strided_slice %6 {offsets = [0, 9], sizes = [8, 1], strides = [1, 1]} : vector<8x12xf32> to vector<8x1xf32>
    %51 = vector.broadcast %50 : vector<8x1xf32> to vector<8x768xf32>
    %52 = arith.mulf %49, %51 : vector<8x768xf32>
    %cst = arith.constant dense<0.000000e+00> : vector<768xf32>
    %53 = vector.multi_reduction <add>, %52, %cst [0] : vector<8x768xf32> to vector<768xf32>
    %54 = vector.shape_cast %53 : vector<768xf32> to vector<1x768xf32>
    %cst_7 = arith.constant 8.000000e+00 : f32
    %55 = vector.broadcast %cst_7 : f32 to vector<1x768xf32>
    %56 = arith.divf %54, %55 : vector<1x768xf32>
    %57 = vector.broadcast %56 : vector<1x768xf32> to vector<8x768xf32>
    %58 = arith.subf %52, %57 : vector<8x768xf32>
    %59 = arith.mulf %58, %58 : vector<8x768xf32>
    %cst_8 = arith.constant dense<0.000000e+00> : vector<768xf32>
    %60 = vector.multi_reduction <add>, %59, %cst_8 [0] : vector<8x768xf32> to vector<768xf32>
    %61 = vector.shape_cast %60 : vector<768xf32> to vector<1x768xf32>
    %cst_9 = arith.constant 0.142857149 : f32
    %62 = vector.broadcast %cst_9 : f32 to vector<1x768xf32>
    %63 = arith.mulf %61, %62 : vector<1x768xf32>
    %cst_10 = arith.constant 9.99999974E-6 : f32
    %64 = vector.broadcast %cst_10 : f32 to vector<1x768xf32>
    %65 = arith.addf %63, %64 : vector<1x768xf32>
    %66 = math.rsqrt %65 : vector<1x768xf32>
    %67 = vector.broadcast %66 : vector<1x768xf32> to vector<8x768xf32>
    %68 = arith.mulf %58, %67 : vector<8x768xf32>
    %69 = vector.extract_strided_slice %6 {offsets = [0, 10], sizes = [8, 1], strides = [1, 1]} : vector<8x12xf32> to vector<8x1xf32>
    %70 = vector.broadcast %69 : vector<8x1xf32> to vector<8x768xf32>
    %71 = arith.mulf %68, %70 : vector<8x768xf32>
    %72 = vector.extract_strided_slice %6 {offsets = [0, 11], sizes = [8, 1], strides = [1, 1]} : vector<8x12xf32> to vector<8x1xf32>
    %73 = vector.broadcast %72 : vector<8x1xf32> to vector<8x768xf32>
    %74 = arith.addf %71, %73 : vector<8x768xf32>
    %75 = arith.truncf %74 : vector<8x768xf32> to vector<8x768xbf16>
    %c0_11 = arith.constant 0 : index
    %c0_12 = arith.constant 0 : index
    %c0_13 = arith.constant 0 : index
    %c0_14 = arith.constant 0 : index
    %76 = vector.load %arg6[%c0_11, %c0_12, %c0_13, %c0_14] : memref<1x1x32x8xbf16, #tpu.memory_space<vmem>>, vector<1x1x32x8xbf16>
    %77 = vector.shape_cast %76 : vector<1x1x32x8xbf16> to vector<32x8xbf16>
    %cst_15 = arith.constant dense<0.000000e+00> : vector<32x768xf32>
    %78 = tpu.matmul %77, %75, %cst_15 {dimension_numbers = #tpu.dot_dimension_numbers<[1], [0], [0], [1], [0, 0, 1, 1], [], []>} : vector<32x8xbf16>, vector<8x768xbf16>, vector<32x768xf32> -> vector<32x768xf32>
    %79 = vector.extract_strided_slice %78 {offsets = [0, 0], sizes = [16, 768], strides = [1, 1]} : vector<32x768xf32> to vector<16x768xf32>
    %80 = vector.extract_strided_slice %78 {offsets = [16, 0], sizes = [16, 768], strides = [1, 1]} : vector<32x768xf32> to vector<16x768xf32>
    %81 = arith.negf %80 : vector<16x768xf32>
    %82 = math.exp %81 : vector<16x768xf32>
    %cst_16 = arith.constant 1.000000e+00 : f32
    %83 = vector.broadcast %cst_16 : f32 to vector<16x768xf32>
    %84 = arith.addf %83, %82 : vector<16x768xf32>
    %85 = arith.divf %83, %84 : vector<16x768xf32>
    %86 = arith.mulf %80, %85 : vector<16x768xf32>
    %87 = arith.mulf %79, %86 : vector<16x768xf32>
    %88 = arith.truncf %87 : vector<16x768xf32> to vector<16x768xbf16>
    %c0_17 = arith.constant 0 : index
    %c0_18 = arith.constant 0 : index
    %c0_19 = arith.constant 0 : index
    %c0_20 = arith.constant 0 : index
    %89 = vector.load %arg7[%c0_17, %c0_18, %c0_19, %c0_20] : memref<1x1x8x16xbf16, #tpu.memory_space<vmem>>, vector<1x1x8x16xbf16>
    %90 = vector.shape_cast %89 : vector<1x1x8x16xbf16> to vector<8x16xbf16>
    %cst_21 = arith.constant dense<0.000000e+00> : vector<8x768xf32>
    %91 = tpu.matmul %90, %88, %cst_21 {dimension_numbers = #tpu.dot_dimension_numbers<[1], [0], [0], [1], [0, 0, 1, 1], [], []>} : vector<8x16xbf16>, vector<16x768xbf16>, vector<8x768xf32> -> vector<8x768xf32>
    %92 = arith.addf %4, %91 : vector<8x768xf32>
    %c0_22 = arith.constant 0 : index
    %c0_23 = arith.constant 0 : index
    %93 = vector.load %arg4[%c0_22, %c0_23] : memref<1x768xf32, #tpu.memory_space<vmem>>, vector<1x768xf32>
    %94 = vector.broadcast %93 : vector<1x768xf32> to vector<8x768xf32>
    %95 = arith.mulf %92, %94 : vector<8x768xf32>
    %c0_24 = arith.constant 0 : index
    %c0_25 = arith.constant 0 : index
    %c0_26 = arith.constant 0 : index
    %96 = vector.load %arg8[%c0_24, %c0_25, %c0_26] : memref<1x8x768xf32, #tpu.memory_space<vmem>>, vector<1x8x768xf32>
    %97 = vector.shape_cast %96 : vector<1x8x768xf32> to vector<8x768xf32>
    %98 = vector.shape_cast %95 : vector<8x768xf32> to vector<1x8x768xf32>
    tpu.vector_store %arg8[%c0_24, %c0_25, %c0_26], %98 {strides = array<i32>} : memref<1x8x768xf32, #tpu.memory_space<vmem>>, vector<1x8x768xf32>,
    return
  }
  func.func @transform_0(%arg0: i32, %arg1: i32, %arg2: i32) -> (i32, i32, i32) {
    %c0_i32 = arith.constant 0 : i32
    %c0_i32_0 = arith.constant 0 : i32
    return %arg0, %c0_i32, %arg1 : i32, i32, i32
  }
  func.func @transform_1(%arg0: i32, %arg1: i32, %arg2: i32) -> (i32, i32) {
    %c0_i32 = arith.constant 0 : i32
    %c0_i32_0 = arith.constant 0 : i32
    %c0_i32_1 = arith.constant 0 : i32
    return %c0_i32, %c0_i32_0 : i32, i32
  }
  func.func @transform_2(%arg0: i32, %arg1: i32, %arg2: i32) -> (i32, i32, i32, i32) {
    %c0_i32 = arith.constant 0 : i32
    %c0_i32_0 = arith.constant 0 : i32
    %c0_i32_1 = arith.constant 0 : i32
    return %arg2, %arg0, %c0_i32, %c0_i32_0 : i32, i32, i32, i32
  }
  func.func @transform_3(%arg0: i32, %arg1: i32, %arg2: i32) -> (i32, i32, i32, i32) {
    %c0_i32 = arith.constant 0 : i32
    %c0_i32_0 = arith.constant 0 : i32
    %c0_i32_1 = arith.constant 0 : i32
    return %arg2, %arg0, %c0_i32, %c0_i32_0 : i32, i32, i32, i32
  }
  func.func @transform_4(%arg0: i32, %arg1: i32, %arg2: i32) -> (i32, i32, i32, i32) {
    %c0_i32 = arith.constant 0 : i32
    %c0_i32_0 = arith.constant 0 : i32
    %c0_i32_1 = arith.constant 0 : i32
    return %arg2, %arg0, %c0_i32, %c0_i32_0 : i32, i32, i32, i32
  }
  func.func @transform_5(%arg0: i32, %arg1: i32, %arg2: i32) -> (i32, i32, i32) {
    %c0_i32 = arith.constant 0 : i32
    %c0_i32_0 = arith.constant 0 : i32
    return %arg0, %c0_i32, %arg1 : i32, i32, i32
  }
}

module attributes {stable_mosaic.version = 11 : i64} {
  func.func @_down_ln_kernel(%arg0: i32, %arg1: i32, %arg2: memref<1x8x128xbf16, #tpu.memory_space<vmem>>, %arg3: memref<1x8x128xbf16, #tpu.memory_space<vmem>>, %arg4: memref<1x8x128xbf16, #tpu.memory_space<vmem>>, %arg5: memref<1x8x128xbf16, #tpu.memory_space<vmem>>, %arg6: memref<1x4x16x8xbf16, #tpu.memory_space<vmem>>, %arg7: memref<1x16x2xf32, #tpu.memory_space<vmem>>, %arg8: memref<1x16x128xf32, #tpu.memory_space<vmem>>) attributes {dimension_semantics = [#tpu.dimension_semantics<parallel>, #tpu.dimension_semantics<parallel>], iteration_bounds = array<i64: 4, 1>, scalar_prefetch = 0 : i64, scratch_operands = 0 : i64, tpu.core_type = #tpu.core_type<tc>, window_params = [{transform_indices = @transform_0, window_bounds = array<i64: 1, 8, 128>}, {transform_indices = @transform_1, window_bounds = array<i64: 1, 8, 128>}, {transform_indices = @transform_2, window_bounds = array<i64: 1, 8, 128>}, {transform_indices = @transform_3, window_bounds = array<i64: 1, 8, 128>}, {transform_indices = @transform_4, window_bounds = array<i64: 1, 4, 16, 8>}, {transform_indices = @transform_5, window_bounds = array<i64: 1, 16, 2>}, {transform_indices = @transform_6, window_bounds = array<i64: 1, 16, 128>}]} {
    %c0 = arith.constant 0 : index
    %c0_0 = arith.constant 0 : index
    %c0_1 = arith.constant 0 : index
    %c0_2 = arith.constant 0 : index
    %0 = vector.load %arg6[%c0, %c0_0, %c0_1, %c0_2] : memref<1x4x16x8xbf16, #tpu.memory_space<vmem>>, vector<1x1x16x8xbf16>
    %1 = vector.shape_cast %0 : vector<1x1x16x8xbf16> to vector<16x8xbf16>
    %c0_3 = arith.constant 0 : index
    %c0_4 = arith.constant 0 : index
    %c0_5 = arith.constant 0 : index
    %2 = vector.load %arg2[%c0_3, %c0_4, %c0_5] : memref<1x8x128xbf16, #tpu.memory_space<vmem>>, vector<1x8x128xbf16>
    %3 = vector.shape_cast %2 : vector<1x8x128xbf16> to vector<8x128xbf16>
    %cst = arith.constant dense<0.000000e+00> : vector<16x128xf32>
    %4 = tpu.matmul %1, %3, %cst {dimension_numbers = #tpu.dot_dimension_numbers<[1], [0], [0], [1], [0, 0, 1, 1], [], []>} : vector<16x8xbf16>, vector<8x128xbf16>, vector<16x128xf32> -> vector<16x128xf32>
    %c0_6 = arith.constant 0 : index
    %c1 = arith.constant 1 : index
    %c0_7 = arith.constant 0 : index
    %c0_8 = arith.constant 0 : index
    %5 = vector.load %arg6[%c0_6, %c1, %c0_7, %c0_8] : memref<1x4x16x8xbf16, #tpu.memory_space<vmem>>, vector<1x1x16x8xbf16>
    %6 = vector.shape_cast %5 : vector<1x1x16x8xbf16> to vector<16x8xbf16>
    %c0_9 = arith.constant 0 : index
    %c0_10 = arith.constant 0 : index
    %c0_11 = arith.constant 0 : index
    %7 = vector.load %arg3[%c0_9, %c0_10, %c0_11] : memref<1x8x128xbf16, #tpu.memory_space<vmem>>, vector<1x8x128xbf16>
    %8 = vector.shape_cast %7 : vector<1x8x128xbf16> to vector<8x128xbf16>
    %cst_12 = arith.constant dense<0.000000e+00> : vector<16x128xf32>
    %9 = tpu.matmul %6, %8, %cst_12 {dimension_numbers = #tpu.dot_dimension_numbers<[1], [0], [0], [1], [0, 0, 1, 1], [], []>} : vector<16x8xbf16>, vector<8x128xbf16>, vector<16x128xf32> -> vector<16x128xf32>
    %10 = arith.addf %4, %9 : vector<16x128xf32>
    %c0_13 = arith.constant 0 : index
    %c2 = arith.constant 2 : index
    %c0_14 = arith.constant 0 : index
    %c0_15 = arith.constant 0 : index
    %11 = vector.load %arg6[%c0_13, %c2, %c0_14, %c0_15] : memref<1x4x16x8xbf16, #tpu.memory_space<vmem>>, vector<1x1x16x8xbf16>
    %12 = vector.shape_cast %11 : vector<1x1x16x8xbf16> to vector<16x8xbf16>
    %c0_16 = arith.constant 0 : index
    %c0_17 = arith.constant 0 : index
    %c0_18 = arith.constant 0 : index
    %13 = vector.load %arg4[%c0_16, %c0_17, %c0_18] : memref<1x8x128xbf16, #tpu.memory_space<vmem>>, vector<1x8x128xbf16>
    %14 = vector.shape_cast %13 : vector<1x8x128xbf16> to vector<8x128xbf16>
    %cst_19 = arith.constant dense<0.000000e+00> : vector<16x128xf32>
    %15 = tpu.matmul %12, %14, %cst_19 {dimension_numbers = #tpu.dot_dimension_numbers<[1], [0], [0], [1], [0, 0, 1, 1], [], []>} : vector<16x8xbf16>, vector<8x128xbf16>, vector<16x128xf32> -> vector<16x128xf32>
    %16 = arith.addf %10, %15 : vector<16x128xf32>
    %c0_20 = arith.constant 0 : index
    %c3 = arith.constant 3 : index
    %c0_21 = arith.constant 0 : index
    %c0_22 = arith.constant 0 : index
    %17 = vector.load %arg6[%c0_20, %c3, %c0_21, %c0_22] : memref<1x4x16x8xbf16, #tpu.memory_space<vmem>>, vector<1x1x16x8xbf16>
    %18 = vector.shape_cast %17 : vector<1x1x16x8xbf16> to vector<16x8xbf16>
    %c0_23 = arith.constant 0 : index
    %c0_24 = arith.constant 0 : index
    %c0_25 = arith.constant 0 : index
    %19 = vector.load %arg5[%c0_23, %c0_24, %c0_25] : memref<1x8x128xbf16, #tpu.memory_space<vmem>>, vector<1x8x128xbf16>
    %20 = vector.shape_cast %19 : vector<1x8x128xbf16> to vector<8x128xbf16>
    %cst_26 = arith.constant dense<0.000000e+00> : vector<16x128xf32>
    %21 = tpu.matmul %18, %20, %cst_26 {dimension_numbers = #tpu.dot_dimension_numbers<[1], [0], [0], [1], [0, 0, 1, 1], [], []>} : vector<16x8xbf16>, vector<8x128xbf16>, vector<16x128xf32> -> vector<16x128xf32>
    %22 = arith.addf %16, %21 : vector<16x128xf32>
    %cst_27 = arith.constant dense<0.000000e+00> : vector<128xf32>
    %23 = vector.multi_reduction <add>, %22, %cst_27 [0] : vector<16x128xf32> to vector<128xf32>
    %24 = vector.shape_cast %23 : vector<128xf32> to vector<1x128xf32>
    %cst_28 = arith.constant 1.600000e+01 : f32
    %25 = vector.broadcast %cst_28 : f32 to vector<1x128xf32>
    %26 = arith.divf %24, %25 : vector<1x128xf32>
    %27 = vector.broadcast %26 : vector<1x128xf32> to vector<16x128xf32>
    %28 = arith.subf %22, %27 : vector<16x128xf32>
    %29 = arith.mulf %28, %28 : vector<16x128xf32>
    %cst_29 = arith.constant dense<0.000000e+00> : vector<128xf32>
    %30 = vector.multi_reduction <add>, %29, %cst_29 [0] : vector<16x128xf32> to vector<128xf32>
    %31 = vector.shape_cast %30 : vector<128xf32> to vector<1x128xf32>
    %cst_30 = arith.constant 0.0666666701 : f32
    %32 = vector.broadcast %cst_30 : f32 to vector<1x128xf32>
    %33 = arith.mulf %31, %32 : vector<1x128xf32>
    %c0_31 = arith.constant 0 : index
    %c0_32 = arith.constant 0 : index
    %c0_33 = arith.constant 0 : index
    %34 = vector.load %arg7[%c0_31, %c0_32, %c0_33] : memref<1x16x2xf32, #tpu.memory_space<vmem>>, vector<1x16x2xf32>
    %35 = vector.shape_cast %34 : vector<1x16x2xf32> to vector<16x2xf32>
    %cst_34 = arith.constant 9.99999974E-6 : f32
    %36 = vector.broadcast %cst_34 : f32 to vector<1x128xf32>
    %37 = arith.addf %33, %36 : vector<1x128xf32>
    %38 = math.rsqrt %37 : vector<1x128xf32>
    %39 = vector.broadcast %38 : vector<1x128xf32> to vector<16x128xf32>
    %40 = arith.mulf %28, %39 : vector<16x128xf32>
    %41 = vector.extract_strided_slice %35 {offsets = [0, 0], sizes = [16, 1], strides = [1, 1]} : vector<16x2xf32> to vector<16x1xf32>
    %42 = vector.broadcast %41 : vector<16x1xf32> to vector<16x128xf32>
    %43 = arith.mulf %40, %42 : vector<16x128xf32>
    %44 = vector.extract_strided_slice %35 {offsets = [0, 1], sizes = [16, 1], strides = [1, 1]} : vector<16x2xf32> to vector<16x1xf32>
    %45 = vector.broadcast %44 : vector<16x1xf32> to vector<16x128xf32>
    %46 = arith.addf %43, %45 : vector<16x128xf32>
    %c0_35 = arith.constant 0 : index
    %c0_36 = arith.constant 0 : index
    %c0_37 = arith.constant 0 : index
    %47 = vector.load %arg8[%c0_35, %c0_36, %c0_37] : memref<1x16x128xf32, #tpu.memory_space<vmem>>, vector<1x16x128xf32>
    %48 = vector.shape_cast %47 : vector<1x16x128xf32> to vector<16x128xf32>
    %49 = vector.shape_cast %46 : vector<16x128xf32> to vector<1x16x128xf32>
    tpu.vector_store %arg8[%c0_35, %c0_36, %c0_37], %49 {strides = array<i32>} : memref<1x16x128xf32, #tpu.memory_space<vmem>>, vector<1x16x128xf32>,
    return
  }
  func.func @transform_0(%arg0: i32, %arg1: i32) -> (i32, i32, i32) {
    %c0_i32 = arith.constant 0 : i32
    %c0_i32_0 = arith.constant 0 : i32
    return %arg0, %c0_i32, %arg1 : i32, i32, i32
  }
  func.func @transform_1(%arg0: i32, %arg1: i32) -> (i32, i32, i32) {
    %c0_i32 = arith.constant 0 : i32
    %c0_i32_0 = arith.constant 0 : i32
    return %arg0, %c0_i32, %arg1 : i32, i32, i32
  }
  func.func @transform_2(%arg0: i32, %arg1: i32) -> (i32, i32, i32) {
    %c0_i32 = arith.constant 0 : i32
    %c0_i32_0 = arith.constant 0 : i32
    return %arg0, %c0_i32, %arg1 : i32, i32, i32
  }
  func.func @transform_3(%arg0: i32, %arg1: i32) -> (i32, i32, i32) {
    %c0_i32 = arith.constant 0 : i32
    %c0_i32_0 = arith.constant 0 : i32
    return %arg0, %c0_i32, %arg1 : i32, i32, i32
  }
  func.func @transform_4(%arg0: i32, %arg1: i32) -> (i32, i32, i32, i32) {
    %c0_i32 = arith.constant 0 : i32
    %c0_i32_0 = arith.constant 0 : i32
    %c0_i32_1 = arith.constant 0 : i32
    %c0_i32_2 = arith.constant 0 : i32
    return %arg0, %c0_i32, %c0_i32_0, %c0_i32_1 : i32, i32, i32, i32
  }
  func.func @transform_5(%arg0: i32, %arg1: i32) -> (i32, i32, i32) {
    %c0_i32 = arith.constant 0 : i32
    %c0_i32_0 = arith.constant 0 : i32
    %c0_i32_1 = arith.constant 0 : i32
    return %arg0, %c0_i32, %c0_i32_0 : i32, i32, i32
  }
  func.func @transform_6(%arg0: i32, %arg1: i32) -> (i32, i32, i32) {
    %c0_i32 = arith.constant 0 : i32
    %c0_i32_0 = arith.constant 0 : i32
    return %arg0, %c0_i32, %arg1 : i32, i32, i32
  }
}

</mosaic_0001>

<bundles_post_ra>
// kernel: freq_cond_stage.2
= control target key start
LH: loop header
LB: loop body
LE: loop exit
PB: predicated region body
PF: predicated region fallthrough
CT: control target
= control target key end

     0   :  { %s1862_s18 = smov 0   ;;  %s1864_s19 = smov 0   ;;  %s2690_s0 = inlined_call_operand.vmem [shape: f32[4,8,768], index: 0, kind: input, shape index: {}, may-alias: {0,5}]   ;;  %s2691_s1 = inlined_call_operand.vmem [shape: f32[1,768], index: 1, kind: input, shape index: {}]   ;;  %s2692_s2 = inlined_call_operand.vmem [shape: f32[2,4,8,12], index: 2, kind: input, shape index: {}]   ;;  %s2693_s3 = inlined_call_operand.vmem [shape: bf16[2,4,32,8], index: 3, kind: input, shape index: {}]   ;;  %s2694_s4 = inlined_call_operand.vmem [shape: bf16[2,4,8,16], index: 4, kind: input, shape index: {}]   ;;  %s2695_s5 = inlined_call_operand.vmem [shape: f32[4,8,768], index: 5, kind: output, shape index: {}, may-alias: {0,5}]  }
   0x1   :  { %s1866_s20 = smov 0   ;;  %s1868_s21 = smov 0  }
   0x2   :  { %s1870_s22 = smov 0  }
   0x3 LB: > { %2697 = sst [smem:[#allocation2_spill]] %s1805_s21  ;;  %s27_s23 = sadd.s32 1, %s1801_s20  ;;  %s1809_s22 = sphi %s1870_s22, %s15_s22   ;;  %s1805_s21 = sphi %s1868_s21, %s2714_s21   ;;  %s1801_s20 = sphi %s1866_s20, %s2716_s20   ;;  %s1797_s19 = sphi %s1864_s19, %s2712_s19   ;;  %s1793_s18 = sphi %s1862_s18, %s2715_s18  }
   0x4   : > { %s34_s24 = sadd.s32 1, %s1805_s21  ;;  %p28_p0 = scmp.ge.s32.totalorder %s27_s23, 2 }
   0x5   : > { %p1576_p1 = scmp.ge.s32.totalorder %s1809_s22, 1  ;;  %p261_p2 = scmp.lt.s32.totalorder %s1809_s22, 9 }
   0x6   : > { %s2718_s23 = smov (%p28_p0, %s27_s23), 0  ;;  %s2720_s24 = smov (!%p28_p0, %s34_s24), %s1805_s21 }
   0x7   : > { %2698 = sst [smem:[#allocation3_spill]] %s2718_s23  ;;  %p262_p3 = pnand %p1576_p1, %p261_p2 }
   0x8   : > { %p36_p4 = scmp.ge.s32.totalorder %s2720_s24, 4  ;;  %p323_p5 = scmp.lt.s32.totalorder (!%p262_p3), %s1797_s19, 3 }
   0x9   : > { %265 = sbr.rel (%p262_p3) target bundleno = 712 (0x2c8), region = 40  ;;  %p332_p6 = scmp.lt.s32.totalorder (!%p262_p3), %s1793_s18, 1 }
   0xa   : > { %s2722_s24 = smov (%p36_p4, %s2720_s24), 0  ;;  %p1586_p7 = scmp.ne.s32.totalorder (!%p262_p3), %s1793_s18, 0 }
   0xb   : > { %2699 = sst [smem:[#allocation4_spill]] %s2722_s24 }
   0xe   : > { %s2724_s19 = smov (!%p323_p5, %s1797_s19), 3 }
   0xf   : > { %s333_s25 = scalar_select %p332_p6, %s1793_s18, 1 }
  0x10   : > { %s1629_s26 = smul.u32 48, %s2724_s19  ;;  %s1580_s27 = sshll.u32 %s2724_s19, 2 }
  0x11   : > { %s1578_s28 = sshll.u32 %s333_s25, 2  ;;  %s1581_s29 = sshll.u32 %s333_s25, 4 }
  0x12   : > { %s330_s7 = scalar_lea.vmem %s2690_s0, %s1629_s26  ;;  %s337_s8 = sadd.s32 %s1578_s28, %s2724_s19 }
  0x13   : > { %s1579_s9 = sshll.u32 %s337_s8, 3  ;;  %s346_s10 = sadd.s32 %s1581_s29, %s1580_s27 }
  0x14   : > { %s339_s13 = scalar_lea.vmem %s2692_s2, %s1579_s9  ;;  %s1582_s14 = sshll.u32 %s346_s10, 2 }
  0x15   : > { %s1905_s17 = scalar_lea.vmem %s2693_s3, %s1582_s14  ;;  %s1584_s24 = sshll.u32 %s337_s8, 2 }
  0x16   : > { %s1910_s21 = scalar_lea.vmem %s2694_s4, %s1584_s24  ;;  %s1915_s27 = scalar_lea.vmem %s2695_s5, %s1629_s26 }
  0x17   : > { %371 = sbr.rel (%p1586_p7) target bundleno = 36 (0x24), region = 44 }
  0x1c   : > { %v372_v0 = vld [vmem:[%s330_s7] sm:$0xff]  ;;  %v373_v1 = vld [vmem:[%s330_s7 + $0x8] sm:$0xff]  ;;  %v374_v2 = vld [vmem:[%s330_s7 + $0x10] sm:$0xff] }
  0x1d   : > { %v375_v3 = vld [vmem:[%s330_s7 + $0x18] sm:$0xff]  ;;  %v376_v4 = vld [vmem:[%s330_s7 + $0x20] sm:$0xff]  ;;  %v377_v5 = vld [vmem:[%s330_s7 + $0x28] sm:$0xff] }
  0x1e   : > { %378 = vst [vmem:[%s1915_s27] sm:$0xff] %v372_v0 }
  0x1f   : > { %379 = vst [vmem:[%s1915_s27 + $0x8] sm:$0xff] %v373_v1 }
  0x20   : > { %380 = vst [vmem:[%s1915_s27 + $0x10] sm:$0xff] %v374_v2 }
  0x21   : > { %381 = vst [vmem:[%s1915_s27 + $0x18] sm:$0xff] %v375_v3 }
  0x22   : > { %382 = vst [vmem:[%s1915_s27 + $0x20] sm:$0xff] %v376_v4 }
  0x23   : > { %383 = vst [vmem:[%s1915_s27 + $0x28] sm:$0xff] %v377_v5 }
  0x24 PF: > { %v1930_v8 = vld [vmem:[%s339_s13] sm:$0xff]  ;;  %v1811_v9 = vmov 0   ;;  %s1812_s18 = smov 19   ;;  %v1813_v10 = vmov 4   ;;  %v1814_v11 = vmov 2   ;;  %s1815_s23 = smov 18   ;;  %v414_v27 = vlaneseq }
  0x25   : > { %v1928_v7 = vld [vmem:[%s1915_s27] sm:$0xff]  ;;  %1692 = vset.pattern.permute.xlu2 %v1811_v9  ;;  %1691 = vset.pattern.permute.xlu1 %v1813_v10  ;;  %v1816_v13 = vmov 1   ;;  %s1817_s24 = smov 17   ;;  %v1818_v14 = vmov 3   ;;  %s1819_s26 = smov 1   ;;  %v1821_v15 = vmov 5  }
  0x26   : > { %402 = vrot.lane.b32.xlu0 %v1928_v7, %s1812_s18  ;;  %424 = vperm.xlu2 %1692, %v1930_v8   ;;  %v1938_v12 = vld [vmem:[%s1915_s27 + $0x8] sm:$0xff]  ;;  %s1820_s28 = smov 127   ;;  %v1822_v17 = vmov 6   ;;  %s1823_s29 = smov 111   ;;  %v1825_v18 = vmov 7   ;;  %v1826_v19 = vmov 9  }
  0x27   : > { %1694 = vset.pattern.permute.xlu0 %v1814_v11  ;;  %v1967_v16 = vld [vmem:[%s1915_s27 + $0x10] sm:$0xff]  ;;  %s1824_s6 = smov 110   ;;  %v1827_v20 = vmov 8   ;;  %s1828_s7 = smov 109   ;;  %v1829_v25 = vmov 11   ;;  %v2034_v31 = vand.u32 127, %v414_v27 }
  0x28   : > { %v1996_v21 = vld [vmem:[%s1915_s27 + $0x18] sm:$0xff]  ;;  %v1830_v43 = vmov 10   ;;  %vm916_vm12 = vcmask 1043456   ;;  %vm909_vm14 = vcmask 64512  }
  0x29   : > { %v2032_v30 = vld [vmem:[%s1915_s27 + $0x20] sm:$0xff]  ;;  %vm416_vm0 = vcmp.lt.s32.totalorder %v2034_v31, 19  ;;  %vm451_vm1 = vcmp.lt.s32.totalorder %v2034_v31, 18  ;;  %vm486_vm2 = vcmp.lt.s32.totalorder %v2034_v31, 17  ;;  %vm521_vm3 = vcmp.lt.s32.totalorder %v2034_v31, 1 }
  0x2a   : > { %v1925_v6 = vld [vmem:[%s1915_s27 + $0x28] sm:$0xff]  ;;  %vm556_vm4 = vcmp.lt.s32.totalorder %v2034_v31, 127  ;;  %vm591_vm5 = vcmp.lt.s32.totalorder %v2034_v31, 111  ;;  %vm626_vm6 = vcmp.lt.s32.totalorder %v2034_v31, 110  ;;  %vm661_vm7 = vcmp.lt.s32.totalorder %v2034_v31, 109 }
  0x2b   : > { %412 = vrot.lane.b32.xlu1 %v1925_v6, %s1812_s18 }
  0x2e   : > { %404 = vrot.lane.b32.xlu0 %v1938_v12, %s1812_s18  ;;  %439 = vrot.lane.b32.xlu2 %v1928_v7, %s1815_s23 }
  0x2f   : > { %1693 = vset.pattern.permute.xlu2 %v1816_v13 }
  0x33   : > { %393 = vperm.xlu1 %1691, %v1930_v8  }
  0x36   : > { %441 = vrot.lane.b32.xlu0 %v1938_v12, %s1815_s23  ;;  %459 = vperm.xlu2 %1693, %v1930_v8  }
  0x3b   : > { %449 = vrot.lane.b32.xlu1 %v1925_v6, %s1815_s23 }
  0x3e   : > { %474 = vrot.lane.b32.xlu0 %v1928_v7, %s1817_s24  ;;  %484 = vrot.lane.b32.xlu2 %v1925_v6, %s1817_s24 }
  0x3f   : > { %1695 = vset.pattern.permute.xlu2 %v1818_v14 }
  0x43   : > { %476 = vrot.lane.b32.xlu1 %v1938_v12, %s1817_s24 }
  0x46   : > { %494 = vperm.xlu0 %1694, %v1930_v8   ;;  %511 = vrot.lane.b32.xlu2 %v1938_v12, %s1819_s26 }
  0x4b   : > { %509 = vrot.lane.b32.xlu1 %v1928_v7, %s1819_s26 }
  0x4e   : > { %544 = vrot.lane.b32.xlu0 %v1928_v7, %s1820_s28  ;;  %529 = vperm.xlu2 %1695, %v1930_v8  }
  0x4f   : > { %1696 = vset.pattern.permute.xlu0 %v1821_v15 }
  0x53   : > { %519 = vrot.lane.b32.xlu1 %v1925_v6, %s1819_s26 }
  0x56   : > { %564 = vperm.xlu0 %1696, %v1930_v8   ;;  %548 = vrot.lane.b32.xlu2 %v1967_v16, %s1820_s28 }
  0x57   : > { %1697 = vset.pattern.permute.xlu2 %v1822_v17  ;;  %v1831_v17 = vmov 8.0  }
  0x58   : > { %1703 = vrcp.f32 %v1831_v17 }
  0x5b   : > { %546 = vrot.lane.b32.xlu1 %v1938_v12, %s1820_s28 }
  0x5e   : > { %614 = vrot.lane.b32.xlu0 %v1928_v7, %s1824_s6  ;;  %581 = vrot.lane.b32.xlu2 %v1938_v12, %s1823_s29 }
  0x5f   : > { %1698 = vset.pattern.permute.xlu0 %v1825_v18 }
  0x63   : > { %579 = vrot.lane.b32.xlu1 %v1928_v7, %s1823_s29 }
  0x66   : > { %634 = vperm.xlu0 %1698, %v1930_v8   ;;  %599 = vperm.xlu2 %1697, %v1930_v8  }
  0x6b   : > { %583 = vrot.lane.b32.xlu1 %v1967_v16, %s1823_s29 }
  0x6e   : > { %1700 = vset.pattern.permute.xlu0 %v1826_v19  ;;  %618 = vrot.lane.b32.xlu2 %v1967_v16, %s1824_s6 }
  0x6f   : > { %685 = vperm.xlu0 %1700, %v1930_v8   ;;  %1699 = vset.pattern.permute.xlu2 %v1827_v20 }
  0x73   : > { %616 = vrot.lane.b32.xlu1 %v1938_v12, %s1824_s6 }
  0x76   : > { %651 = vrot.lane.b32.xlu2 %v1938_v12, %s1828_s7 }
  0x77   : > { %478 = vrot.lane.b32.xlu0 %v1967_v16, %s1817_s24 }
  0x78   : > { %1702 = vset.pattern.permute.xlu0 %v1829_v25 }
  0x7b   : > { %649 = vrot.lane.b32.xlu1 %v1928_v7, %s1828_s7 }
  0x7e   : > { %669 = vperm.xlu2 %1699, %v1930_v8  }
  0x7f   : > { %515 = vrot.lane.b32.xlu0 %v1996_v21, %s1819_s26 }
  0x80   : > { %v2003_v22 = vpop.permute.xlu2 %424 }
  0x83   : > { %653 = vrot.lane.b32.xlu1 %v1967_v16, %s1828_s7 }
  0x86   : > { %408 = vrot.lane.b32.xlu2 %v1996_v21, %s1812_s18 }
  0x87   : > { %585 = vrot.lane.b32.xlu0 %v1996_v21, %s1823_s29  ;;  %1701 = vset.pattern.permute.xlu2 %v1830_v43 }
  0x88   : > { %v2011_v23 = vpop.permute.xlu2 %439 }
  0x8b   : > { %406 = vrot.lane.b32.xlu1 %v1967_v16, %s1812_s18 }
  0x8e   : > { %445 = vrot.lane.b32.xlu2 %v1996_v21, %s1815_s23 }
  0x8f   : > { %620 = vrot.lane.b32.xlu0 %v1996_v21, %s1824_s6 }
  0x90   : > { %v2019_v24 = vpop.permute.xlu2 %459 }
  0x93   : > { %443 = vrot.lane.b32.xlu1 %v1967_v16, %s1815_s23 }
  0x96   : > { %513 = vrot.lane.b32.xlu2 %v1967_v16, %s1819_s26 }
  0x97   : > { %655 = vrot.lane.b32.xlu0 %v1996_v21, %s1828_s7 }
  0x98   : > { %v403_v28 = vpop.permute.xlu0 %402  ;;  %v2029_v29 = vpop.permute.xlu2 %484 }
  0x9b   : > { %480 = vrot.lane.b32.xlu1 %v1996_v21, %s1817_s24 }
  0x9d   : > { %v2027_v26 = vpop.permute.xlu1 %412 }
  0x9e   : > { %552 = vrot.lane.b32.xlu2 %v2032_v30, %s1820_s28  ;;  %v422_v62 = vsel %vm416_vm0, %v2027_v26, %v403_v28 }
  0x9f   : > { %517 = vrot.lane.b32.xlu0 %v2032_v30, %s1819_s26  ;;  %v427_v3 = vmul.f32 %v2003_v22, %v422_v62 }
  0xa0   : > { %v2047_v34 = vpop.permute.xlu0 %404  ;;  %v2049_v35 = vpop.permute.xlu2 %511 }
  0xa1   : > { %v421_v36 = vsel %vm416_vm0, %v403_v28, %v2047_v34 }
  0xa2   : > { %v428_v37 = vmul.f32 %v2003_v22, %v421_v36 }
  0xa3   : > { %550 = vrot.lane.b32.xlu1 %v1996_v21, %s1820_s28 }
  0xa5   : > { %v2042_v32 = vpop.permute.xlu1 %393 }
  0xa6   : > { %v397_v33 = vmul.f32 %v2042_v32, %v1938_v12  ;;  %410 = vrot.lane.b32.xlu2 %v2032_v30, %s1812_s18  ;;  %v396_v2 = vmul.f32 %v2042_v32, %v1928_v7 }
  0xa7   : > { %624 = vrot.lane.b32.xlu0 %v1925_v6, %s1824_s6 }
  0xa8   : > { %v434_v38 = vadd.f32 %v428_v37, %v397_v33  ;;  %v2064_v40 = vpop.permute.xlu0 %441  ;;  %v2066_v41 = vpop.permute.xlu2 %529  ;;  %v433_v9 = vadd.f32 %v427_v3, %v396_v2 }
  0xa9   : > { %v456_v42 = vsel %vm451_vm1, %v2011_v23, %v2064_v40 }
  0xaa   : > { %v463_v44 = vmul.f32 %v2019_v24, %v456_v42  ;;  %v1704_v42 = vpop.eup %1703 }
  0xab   : > { %587 = vrot.lane.b32.xlu1 %v2032_v30, %s1823_s29  ;;  %vm735_vm8 = vweird.f32 %v1704_v42 }
  0xac   : > { %v2073_v45 = vadd.f32 %v463_v44, %v434_v38 }
  0xad   : > { %v2062_v39 = vpop.permute.xlu1 %449 }
  0xae   : > { %447 = vrot.lane.b32.xlu2 %v2032_v30, %s1815_s23  ;;  %v457_v63 = vsel %vm451_vm1, %v2062_v39, %v2011_v23 }
  0xaf   : > { %880 = vperm.xlu0 %1702, %v1930_v8   ;;  %v462_v4 = vmul.f32 %v2019_v24, %v457_v63 }
  0xb0   : > { %v475_v47 = vpop.permute.xlu0 %474  ;;  %v2082_v48 = vpop.permute.xlu2 %548 }
  0xb1   : > { %v492_v5 = vsel %vm486_vm2, %v2029_v29, %v475_v47  ;;  %v468_v11 = vadd.f32 %v462_v4, %v433_v9 }
  0xb3   : > { %622 = vrot.lane.b32.xlu1 %v2032_v30, %s1824_s6 }
  0xb5   : > { %v2079_v46 = vpop.permute.xlu1 %476 }
  0xb6   : > { %482 = vrot.lane.b32.xlu2 %v2032_v30, %s1817_s24  ;;  %v491_v23 = vsel %vm486_vm2, %v475_v47, %v2079_v46 }
  0xb8   : > { %v2088_v50 = vpop.permute.xlu0 %494  ;;  %v582_v51 = vpop.permute.xlu2 %581 }
  0xb9   : > { %v497_v7 = vmul.f32 %v2088_v50, %v492_v5  ;;  %v498_v27 = vmul.f32 %v2088_v50, %v491_v23 }
  0xbb   : > { %657 = vrot.lane.b32.xlu1 %v2032_v30, %s1828_s7  ;;  %v503_v18 = vadd.f32 %v497_v7, %v468_v11  ;;  %v504_v62 = vadd.f32 %v498_v27, %v2073_v45  ;;  %v731_v45 = vmul.f32 8.0, %v1704_v42 }
  0xbd   : > { %v510_v49 = vpop.permute.xlu1 %509  ;;  %v732_v17 = vsub.f32 1.0, %v731_v45 }
  0xbe   : > { %589 = vrot.lane.b32.xlu2 %v1925_v6, %s1823_s29  ;;  %v526_v36 = vsel %vm521_vm3, %v510_v49, %v2049_v35 }
  0xbf   : > { %v533_v44 = vmul.f32 %v2066_v41, %v526_v36 }
  0xc0   : > { %v2096_v53 = vpop.permute.xlu2 %599  ;;  %v2098_v54 = vpop.permute.xlu0 %544 }
  0xc3   : > { %554 = vrot.lane.b32.xlu1 %v1925_v6, %s1820_s28 }
  0xc5   : > { %v2094_v52 = vpop.permute.xlu1 %519 }
  0xc6   : > { %870 = vperm.xlu2 %1701, %v1930_v8   ;;  %v527_v8 = vsel %vm521_vm3, %v2094_v52, %v510_v49 }
  0xc7   : > { %v532_v12 = vmul.f32 %v2066_v41, %v527_v8 }
  0xc8   : > { %v2103_v56 = vpop.permute.xlu2 %618  ;;  %v2105_v57 = vpop.permute.xlu0 %564 }
  0xc9   : > { %v538_v28 = vadd.f32 %v532_v12, %v503_v18 }
  0xcb   : > { %659 = vrot.lane.b32.xlu1 %v1925_v6, %s1828_s7 }
  0xcd   : > { %v547_v55 = vpop.permute.xlu1 %546 }
  0xce   : > { %v561_v10 = vsel %vm556_vm4, %v2098_v54, %v547_v55  ;;  %v560_v43 = vsel %vm556_vm4, %v547_v55, %v2082_v48 }
  0xcf   : > { %v567_v19 = vmul.f32 %v2105_v57, %v561_v10  ;;  %v568_v55 = vmul.f32 %v2105_v57, %v560_v43 }
  0xd0   : > { %v2109_v59 = vpop.permute.xlu2 %651  ;;  %v2111_v60 = vpop.permute.xlu0 %614 }
  0xd1   : > { %v573_v37 = vadd.f32 %v567_v19, %v538_v28 }
  0xd5   : > { %v2107_v58 = vpop.permute.xlu1 %579 }
  0xd6   : > { %v596_v14 = vsel %vm591_vm5, %v2107_v58, %v582_v51 }
  0xd7   : > { %v602_v33 = vmul.f32 %v2096_v53, %v596_v14 }
  0xd8   : > { %v2122_v0 = vpop.permute.xlu2 %669  ;;  %v2124_v1 = vpop.permute.xlu0 %634 }
  0xd9   : > { %v608_v47 = vadd.f32 %v602_v33, %v573_v37  ;;  %v733_v37 = vmul.f32 %v1704_v42, %v732_v17 }
  0xdd   : > { %v2113_v61 = vpop.permute.xlu1 %583 }
  0xde   : > { %v595_v49 = vsel %vm591_vm5, %v582_v51, %v2113_v61  ;;  %v539_v51 = vadd.f32 %v533_v44, %v504_v62  ;;  %v734_v62 = vadd.f32 %v1704_v42, %v733_v37 }
  0xdf   : > { %v603_v7 = vmul.f32 %v2096_v53, %v595_v49 }
  0xe0   : > { %v2149_v15 = vpop.permute.xlu2 %408  ;;  %v574_v11 = vadd.f32 %v568_v55, %v539_v51 }
  0xe1   : > { %v2152_v20 = vpop.permute.xlu0 %685 }
  0xe2   : > { %v609_v18 = vadd.f32 %v603_v7, %v574_v11 }
  0xe5   : > { %v617_v13 = vpop.permute.xlu1 %616 }
  0xe6   : > { %v631_v25 = vsel %vm626_vm6, %v2111_v60, %v617_v13  ;;  %v630_v9 = vsel %vm626_vm6, %v617_v13, %v2103_v56 }
  0xe7   : > { %v637_v38 = vmul.f32 %v2124_v1, %v631_v25  ;;  %v638_v12 = vmul.f32 %v2124_v1, %v630_v9  ;;  %v2209_v9 = vsel %vm735_vm8, %v1704_v42, %v734_v62 }
  0xe8   : > { %v2181_v3 = vpop.permute.xlu2 %445 }
  0xe9   : > { %v643_v4 = vadd.f32 %v637_v38, %v608_v47  ;;  %v2185_v8 = vpop.permute.xlu0 %478  ;;  %v644_v27 = vadd.f32 %v638_v12, %v609_v18  ;;  %v398_v18 = vmul.f32 %v2042_v32, %v1967_v16 }
  0xea   : > { %v490_v42 = vsel %vm486_vm2, %v2079_v46, %v2185_v8  ;;  %v400_v46 = vmul.f32 %v2042_v32, %v2032_v30 }
  0xed   : > { %v2172_v63 = vpop.permute.xlu1 %649 }
  0xee   : > { %v666_v2 = vsel %vm661_vm7, %v2172_v63, %v2109_v59 }
  0xef   : > { %v672_v5 = vmul.f32 %v2122_v0, %v666_v2 }
  0xf0   : > { %v2199_v13 = vpop.permute.xlu2 %513 }
  0xf1   : > { %v678_v10 = vadd.f32 %v672_v5, %v643_v4  ;;  %v2202_v36 = vpop.permute.xlu0 %515 }
  0xf3   : > { %v688_v14 = vmul.f32 %v2152_v20, %v678_v10 }
  0xf5   : > { %v694_v19 = vrot.slane %v688_v14, 4  ;;  %v2193_v23 = vpop.permute.xlu1 %653 }
  0xf6   : > { %v665_v25 = vsel %vm661_vm7, %v2109_v59, %v2193_v23 }
  0xf7   : > { %v695_v28 = vadd.f32 %v694_v19, %v688_v14  ;;  %v673_v33 = vmul.f32 %v2122_v0, %v665_v25 }
  0xf8   : > { %v2205_v59 = vpop.permute.xlu2 %552 }
  0xf9   : > { %v696_v38 = vrot.slane %v695_v28, 2  ;;  %v679_v43 = vadd.f32 %v673_v33, %v644_v27  ;;  %v2207_v5 = vpop.permute.xlu0 %585 }
  0xfb   : > { %v697_v44 = vadd.f32 %v696_v38, %v695_v28  ;;  %v689_v47 = vmul.f32 %v2152_v20, %v679_v43  ;;  %v499_v43 = vmul.f32 %v2088_v50, %v490_v42 }
  0xfd   : > { %v700_v49 = vrot.slane %v689_v47, 4  ;;  %v407_v2 = vpop.permute.xlu1 %406  ;;  %v698_v55 = vrot.slane %v697_v44, 1 }
  0xfe   : > { %v420_v51 = vsel %vm416_vm0, %v2047_v34, %v407_v2 }
  0xff   : > { %v701_v4 = vadd.f32 %v700_v49, %v689_v47  ;;  %v699_v45 = vadd.f32 %v698_v55, %v697_v44  ;;  %v429_v12 = vmul.f32 %v2003_v22, %v420_v51 }
 0x100   : > { %v2227_v27 = vpop.permute.xlu2 %410 }
 0x101   : > { %v702_v7 = vrot.slane %v701_v4, 2  ;;  %v737_v10 = vmul.f32 %v2209_v9, %v699_v45  ;;  %v435_v28 = vadd.f32 %v429_v12, %v398_v18  ;;  %v418_v16 = vsel %vm416_vm0, %v2149_v15, %v2227_v27  ;;  %v2236_v37 = vpop.permute.xlu0 %620 }
 0x103   : > { %v703_v11 = vadd.f32 %v702_v7, %v701_v4  ;;  %v2216_v17 = vsub.f32 %v688_v14, %v737_v10 }
 0x105   : > { %v444_v19 = vpop.permute.xlu1 %443  ;;  %v704_v25 = vrot.slane %v703_v11, 1  ;;  %v749_v14 = vmul.f32 %v2216_v17, %v2216_v17 }
 0x106   : > { %v455_v34 = vsel %vm451_vm1, %v2064_v40, %v444_v19  ;;  %v431_v40 = vmul.f32 %v2003_v22, %v418_v16 }
 0x107   : > { %v464_v33 = vmul.f32 %v2019_v24, %v455_v34  ;;  %v755_v38 = vrot.slane %v749_v14, 4  ;;  %v705_v62 = vadd.f32 %v704_v25, %v703_v11  ;;  %v525_v34 = vsel %vm521_vm3, %v2049_v35, %v2199_v13 }
 0x108   : > { %v2242_v49 = vadd.f32 %v431_v40, %v400_v46  ;;  %v2249_v30 = vpop.permute.xlu2 %447  ;;  %v534_v46 = vmul.f32 %v2066_v41, %v525_v34  ;;  %v399_v40 = vmul.f32 %v2042_v32, %v1996_v21  ;;  %v594_v35 = vsel %vm591_vm5, %v2113_v61, %v2207_v5 }
 0x109   : > { %v470_v44 = vadd.f32 %v464_v33, %v435_v28  ;;  %v756_v55 = vadd.f32 %v755_v38, %v749_v14  ;;  %v738_v45 = vmul.f32 %v2209_v9, %v705_v62  ;;  %v2251_v18 = vpop.permute.xlu0 %655  ;;  %v454_v33 = vsel %vm451_vm1, %v444_v19, %v2181_v3 }
 0x10a   : > { %v465_v21 = vmul.f32 %v2019_v24, %v454_v33  ;;  %v629_v61 = vsel %vm626_vm6, %v2103_v56, %v2236_v37  ;;  %v524_v56 = vsel %vm521_vm3, %v2199_v13, %v2202_v36 }
 0x10b   : > { %v505_v4 = vadd.f32 %v499_v43, %v470_v44  ;;  %v757_v51 = vrot.slane %v756_v55, 2  ;;  %v2247_v10 = vsub.f32 %v689_v47, %v738_v45  ;;  %v419_v47 = vsel %vm416_vm0, %v407_v2, %v2149_v15 }
 0x10c   : > { %v430_v38 = vmul.f32 %v2003_v22, %v419_v47 }
 0x10d   : > { %v2245_v7 = vpop.permute.xlu1 %480  ;;  %v758_v12 = vadd.f32 %v757_v51, %v756_v55  ;;  %v750_v42 = vmul.f32 %v2247_v10, %v2247_v10  ;;  %v540_v44 = vadd.f32 %v534_v46, %v505_v4  ;;  %v604_v51 = vmul.f32 %v2096_v53, %v594_v35 }
 0x10e   : > { %v489_v15 = vsel %vm486_vm2, %v2185_v8, %v2245_v7  ;;  %v436_v8 = vadd.f32 %v430_v38, %v399_v40  ;;  %v664_v4 = vsel %vm661_vm7, %v2193_v23, %v2251_v18  ;;  %v535_v38 = vmul.f32 %v2066_v41, %v524_v56 }
 0x10f   : > { %v759_v11 = vrot.slane %v758_v12, 1  ;;  %v761_v25 = vrot.slane %v750_v42, 4 }
 0x111   : > { %v760_v14 = vadd.f32 %v759_v11, %v758_v12  ;;  %v762_v28 = vadd.f32 %v761_v25, %v750_v42  ;;  %v2284_v55 = vpop.permute.xlu0 %517  ;;  %v483_v42 = vpop.permute.xlu2 %482  ;;  %v471_v11 = vadd.f32 %v465_v21, %v436_v8  ;;  %v639_v25 = vmul.f32 %v2124_v1, %v629_v61 }
 0x113   : > { %v791_v16 = vmul.f32 0.14285715, %v760_v14  ;;  %v763_v45 = vrot.slane %v762_v28, 2 }
 0x115   : > { %v551_v43 = vpop.permute.xlu1 %550  ;;  %v2280_v19 = vadd.f32 1e-05, %v791_v16  ;;  %v764_v47 = vadd.f32 %v763_v45, %v762_v28  ;;  %v674_v16 = vmul.f32 %v2122_v0, %v664_v4 }
 0x116   : > { %v559_v2 = vsel %vm556_vm4, %v2082_v48, %v551_v43  ;;  %v500_v48 = vmul.f32 %v2088_v50, %v489_v15  ;;  %v558_v14 = vsel %vm556_vm4, %v551_v43, %v2205_v59 }
 0x117   : > { %v569_v62 = vmul.f32 %v2105_v57, %v559_v2  ;;  %1705 = vrsqrt.f32 %v2280_v19  ;;  %v765_v40 = vrot.slane %v764_v47, 1  ;;  %v570_v13 = vmul.f32 %v2105_v57, %v558_v14 }
 0x118   : > { %v506_v33 = vadd.f32 %v500_v48, %v471_v11  ;;  %v417_v11 = vsel %vm416_vm0, %v2227_v27, %v2027_v26  ;;  %vm809_vm10 = vweird.f32 %v2280_v19 }
 0x119   : > { %v575_v12 = vadd.f32 %v569_v62, %v540_v44  ;;  %v625_v15 = vpop.permute.xlu0 %624  ;;  %v766_v21 = vadd.f32 %v765_v40, %v764_v47  ;;  %v2325_v48 = vpop.permute.xlu2 %589  ;;  %v452_v40 = vsel %vm451_vm1, %v2249_v30, %v2062_v39 }
 0x11a   : > { %v632_v43 = vsel %vm626_vm6, %v625_v15, %v2111_v60  ;;  %v541_v44 = vadd.f32 %v535_v38, %v506_v33 }
 0x11b   : > { %v610_v34 = vadd.f32 %v604_v51, %v575_v12  ;;  %v2319_v45 = vmul.f32 %v2124_v1, %v632_v43  ;;  %v792_v61 = vmul.f32 0.14285715, %v766_v21 }
 0x11c   : > { %v576_v51 = vadd.f32 %v570_v13, %v541_v44 }
 0x11d   : > { %v645_v23 = vadd.f32 %v639_v25, %v610_v34  ;;  %v2306_v46 = vpop.permute.xlu1 %587  ;;  %v1706_v2 = vpop.eup %1705  ;;  %v2327_v4 = vadd.f32 1e-05, %v792_v61  ;;  %v453_v25 = vsel %vm451_vm1, %v2181_v3, %v2249_v30 }
 0x11e   : > { %v593_v28 = vsel %vm591_vm5, %v2207_v5, %v2306_v46  ;;  %v804_v5 = vmul.f32 %v1706_v2, %v2280_v19  ;;  %vm810_vm9 = vweird.f32 %v1706_v2 }
 0x11f   : > { %v680_v35 = vadd.f32 %v674_v16, %v645_v23  ;;  %v605_v62 = vmul.f32 %v2096_v53, %v593_v28  ;;  %1707 = vrsqrt.f32 %v2327_v4  ;;  %v432_v23 = vmul.f32 %v2003_v22, %v417_v11  ;;  %vm811_vm11 = vmor %vm809_vm10, %vm810_vm9 }
 0x120   : > { %v805_v12 = vmul.f32 %v1706_v2, %v804_v5  ;;  %v488_v28 = vsel %vm486_vm2, %v2245_v7, %v483_v42  ;;  %v401_v22 = vmul.f32 %v2042_v32, %v1925_v6  ;;  %v467_v7 = vmul.f32 %v2019_v24, %v452_v40 }
 0x121   : > { %v2323_v8 = vmul.f32 %v2152_v20, %v680_v35  ;;  %v611_v34 = vadd.f32 %v605_v62, %v576_v51  ;;  %v487_v35 = vsel %vm486_vm2, %v483_v42, %v2029_v29  ;;  %v2364_v39 = vpop.permute.xlu2 %870  ;;  %v501_v21 = vmul.f32 %v2088_v50, %v488_v28  ;;  %v2370_v5 = vpop.permute.xlu0 %880 }
 0x122   : > { %v806_v56 = vmul.f32 0.5, %v805_v12  ;;  %v438_v44 = vadd.f32 %v432_v23, %v401_v22  ;;  %v502_v42 = vmul.f32 %v2088_v50, %v487_v35  ;;  %v2404_v23 = vld [vmem:[%s1905_s17] sm:$0xff]  ;;  %vm819_vm15 = vweird.f32 %v2327_v4 }
 0x123   : > { %v706_v60 = vrot.slane %v2323_v8, 4 }
 0x124   : > { %v807_v16 = vsub.f32 1.5, %v806_v56  ;;  %v473_v12 = vadd.f32 %v467_v7, %v438_v44 }
 0x125   : > { %v623_v47 = vpop.permute.xlu1 %622  ;;  %v707_v3 = vadd.f32 %v706_v60, %v2323_v8  ;;  %v1708_v43 = vpop.eup %1707 }
 0x126   : > { %v627_v14 = vsel %vm626_vm6, %v623_v47, %v625_v15  ;;  %v628_v33 = vsel %vm626_vm6, %v2236_v37, %v623_v47  ;;  %v466_v37 = vmul.f32 %v2019_v24, %v453_v25  ;;  %v808_v13 = vmul.f32 %v1706_v2, %v807_v16 }
 0x127   : > { %v640_v26 = vmul.f32 %v2124_v1, %v628_v33  ;;  %v2346_v27 = vmul.f32 %v2124_v1, %v627_v14  ;;  %v708_v1 = vrot.slane %v707_v3, 2  ;;  %v814_v29 = vmul.f32 %v1708_v43, %v2327_v4 }
 0x128   : > { %v812_v30 = vsel %vm811_vm11, %v1706_v2, %v808_v13  ;;  %v472_v62 = vadd.f32 %v466_v37, %v2242_v49  ;;  %v522_v24 = vsel %vm521_vm3, %v2284_v55, %v2094_v52  ;;  %v523_v2 = vsel %vm521_vm3, %v2202_v36, %v2284_v55 }
 0x129   : > { %v646_v38 = vadd.f32 %v640_v26, %v611_v34  ;;  %v709_v15 = vadd.f32 %v708_v1, %v707_v3  ;;  %v863_v19 = vmul.f32 %v812_v30, %v2216_v17  ;;  %v815_v50 = vmul.f32 %v1708_v43, %v814_v29 }
 0x12a   : > { %v507_v60 = vadd.f32 %v501_v21, %v472_v62  ;;  %v508_v34 = vadd.f32 %v502_v42, %v473_v12  ;;  %v536_v47 = vmul.f32 %v2066_v41, %v523_v2  ;;  %v537_v56 = vmul.f32 %v2066_v41, %v522_v24 }
 0x12b   : > { %v710_v32 = vrot.slane %v709_v15, 1  ;;  %v873_v49 = vmul.f32 %v2364_v39, %v863_v19  ;;  %v816_v25 = vmul.f32 0.5, %v815_v50  ;;  %vm820_vm13 = vweird.f32 %v1708_v43 }
 0x12c   : > { %v542_v26 = vadd.f32 %v536_v47, %v507_v60  ;;  %v592_v16 = vsel %vm591_vm5, %v2306_v46, %v2325_v48  ;;  %v543_v28 = vadd.f32 %v537_v56, %v508_v34  ;;  %v597_v46 = vsel %vm591_vm5, %v2325_v48, %v2107_v58  ;;  %vm821_vm0 = vmor %vm819_vm15, %vm820_vm13 }
 0x12d   : > { %v2372_v6 = vpop.permute.xlu1 %657  ;;  %v711_v51 = vadd.f32 %v710_v32, %v709_v15  ;;  %v883_v52 = vadd.f32 %v2370_v5, %v873_v49  ;;  %v817_v14 = vsub.f32 1.5, %v816_v25  ;;  %v606_v30 = vmul.f32 %v2096_v53, %v592_v16 }
 0x12e   : > { %v663_v17 = vsel %vm661_vm7, %v2251_v18, %v2372_v6  ;;  %v607_v48 = vmul.f32 %v2096_v53, %v597_v46 }
 0x12f   : > { %v675_v61 = vmul.f32 %v2122_v0, %v663_v17  ;;  %v739_v18 = vmul.f32 %v2209_v9, %v711_v51  ;;  %v889_v36 = vpack.c.bf16 %v883_v52, %v883_v52  ;;  %v818_v37 = vmul.f32 %v1708_v43, %v817_v14 }
 0x131   : > { %v681_v11 = vadd.f32 %v675_v61, %v646_v38  ;;  %v2396_v33 = vsub.f32 %v2323_v8, %v739_v18  ;;  %v918_v3 = vsel %vm916_vm12, %v889_v36, 0  ;;  %v822_v35 = vsel %vm821_vm0, %v1708_v43, %v818_v37 }
 0x132   : > { %942 = vmatpush.bf16.msra.mxu0 %v918_v3  ;;  %v864_v58 = vmul.f32 %v822_v35, %v2247_v10 }
 0x133   : > { %v691_v55 = vmul.f32 %v2152_v20, %v681_v11  ;;  %v751_v8 = vmul.f32 %v2396_v33, %v2396_v33 }
 0x134   : > { %v874_v21 = vmul.f32 %v2364_v39, %v864_v58 }
 0x135   : > { %v712_v41 = vrot.slane %v691_v55, 4  ;;  %v555_v40 = vpop.permute.xlu1 %554  ;;  %1595 = vmatmul.msk.bf16.vlgmr.msra.gmra.mxu0 %vm909_vm14, %v2404_v23 }
 0x136   : > { %v557_v38 = vsel %vm556_vm4, %v2205_v59, %v555_v40  ;;  %v562_v13 = vsel %vm556_vm4, %v555_v40, %v2098_v54  ;;  %v767_v59 = vrot.slane %v751_v8, 4  ;;  %v884_v43 = vadd.f32 %v2370_v5, %v874_v21 }
 0x137   : > { %v713_v4 = vadd.f32 %v712_v41, %v691_v55  ;;  %v571_v1 = vmul.f32 %v2105_v57, %v557_v38  ;;  %v572_v22 = vmul.f32 %v2105_v57, %v562_v13 }
 0x138   : > { %v768_v19 = vadd.f32 %v767_v59, %v751_v8  ;;  %v890_v17 = vpack.c.bf16 %v884_v43, %v884_v43 }
 0x139   : > { %v714_v15 = vrot.slane %v713_v4, 2  ;;  %v577_v54 = vadd.f32 %v571_v1, %v542_v26  ;;  %v578_v7 = vadd.f32 %v572_v22, %v543_v28 }
 0x13a   : > { %v769_v29 = vrot.slane %v768_v19, 2 }
 0x13b   : > { %v715_v44 = vadd.f32 %v714_v15, %v713_v4  ;;  %v612_v62 = vadd.f32 %v606_v30, %v577_v54  ;;  %v613_v57 = vadd.f32 %v607_v48, %v578_v7 }
 0x13c   : > { %v770_v2 = vadd.f32 %v769_v29, %v768_v19 }
 0x13d   : > { %v660_v32 = vpop.permute.xlu1 %659  ;;  %v647_v42 = vadd.f32 %v2346_v27, %v612_v62  ;;  %v648_v10 = vadd.f32 %v2319_v45, %v613_v57  ;;  %v716_v24 = vrot.slane %v715_v44, 1  ;;  %v921_v27 = vsel %vm916_vm12, %v890_v17, 0 }
 0x13e   : > { %v662_v53 = vsel %vm661_vm7, %v2372_v6, %v660_v32  ;;  %v667_v49 = vsel %vm661_vm7, %v660_v32, %v2172_v63  ;;  %v771_v45 = vrot.slane %v770_v2, 1  ;;  %961 = vmatpush.bf16.msra.mxu1 %v921_v27 }
 0x13f   : > { %v676_v61 = vmul.f32 %v2122_v0, %v662_v53  ;;  %v677_v50 = vmul.f32 %v2122_v0, %v667_v49  ;;  %v717_v51 = vadd.f32 %v716_v24, %v715_v44  ;;  %v2448_v0 = vld [vmem:[%s1905_s17 + $0x8] sm:$0xff] }
 0x140   : > { %v772_v6 = vadd.f32 %v771_v45, %v770_v2 }
 0x141   : > { %v682_v12 = vadd.f32 %v676_v61, %v647_v42  ;;  %v683_v60 = vadd.f32 %v677_v50, %v648_v10  ;;  %v740_v52 = vmul.f32 %v2209_v9, %v717_v51  ;;  %1597 = vmatmul.msk.bf16.vlgmr.msra.gmra.mxu1 %vm909_vm14, %v2404_v23 }
 0x142   : > { %v793_v25 = vmul.f32 0.14285715, %v772_v6 }
 0x143   : > { %v692_v11 = vmul.f32 %v2152_v20, %v682_v12  ;;  %v693_v31 = vmul.f32 %v2152_v20, %v683_v60  ;;  %v2443_v63 = vsub.f32 %v691_v55, %v740_v52 }
 0x144   : > { %v799_v56 = vadd.f32 1e-05, %v793_v25 }
 0x145   : > { %v718_v18 = vrot.slane %v692_v11, 4  ;;  %v724_v34 = vrot.slane %v693_v31, 4  ;;  %v752_v47 = vmul.f32 %v2443_v63, %v2443_v63  ;;  %1596 = vmatmul.msk.bf16.gmra.mxu0 %vm909_vm14, %v2448_v0 }
 0x146   : > { %1709 = vrsqrt.f32 %v799_v56  ;;  %vm829_vm2 = vweird.f32 %v799_v56 }
 0x147   : > { %v719_v36 = vadd.f32 %v718_v18, %v692_v11  ;;  %v725_v14 = vadd.f32 %v724_v34, %v693_v31  ;;  %v773_v26 = vrot.slane %v752_v47, 4 }
 0x149   : > { %v720_v20 = vrot.slane %v719_v36, 2  ;;  %v726_v55 = vrot.slane %v725_v14, 2  ;;  %v774_v16 = vadd.f32 %v773_v26, %v752_v47 }
 0x14b   : > { %v721_v3 = vadd.f32 %v720_v20, %v719_v36  ;;  %v727_v41 = vadd.f32 %v726_v55, %v725_v14  ;;  %v775_v40 = vrot.slane %v774_v16, 2 }
 0x14c   : > { %v1710_v46 = vpop.eup %1709 }
 0x14d   : > { %v776_v37 = vadd.f32 %v775_v40, %v774_v16  ;;  %v722_v8 = vrot.slane %v721_v3, 1  ;;  %v728_v28 = vrot.slane %v727_v41, 1  ;;  %v824_v38 = vmul.f32 %v1710_v46, %v799_v56 }
 0x14e   : > { %vm830_vm1 = vweird.f32 %v1710_v46 }
 0x14f   : > { %v777_v13 = vrot.slane %v776_v37, 1  ;;  %v723_v4 = vadd.f32 %v722_v8, %v721_v3  ;;  %v729_v1 = vadd.f32 %v728_v28, %v727_v41  ;;  %v825_v22 = vmul.f32 %v1710_v46, %v824_v38  ;;  %vm831_vm3 = vmor %vm829_vm2, %vm830_vm1 }
 0x151   : > { %v778_v35 = vadd.f32 %v777_v13, %v776_v37  ;;  %v741_v30 = vmul.f32 %v2209_v9, %v723_v4  ;;  %v742_v58 = vmul.f32 %v2209_v9, %v729_v1  ;;  %v826_v59 = vmul.f32 0.5, %v825_v22  ;;  %1598 = vmatmul.msk.bf16.gmra.mxu1 %vm909_vm14, %v2448_v0 }
 0x153   : > { %v794_v48 = vmul.f32 0.14285715, %v778_v35  ;;  %v2456_v15 = vsub.f32 %v692_v11, %v741_v30  ;;  %v2460_v54 = vsub.f32 %v693_v31, %v742_v58  ;;  %v827_v7 = vsub.f32 1.5, %v826_v59 }
 0x155   : > { %v800_v21 = vadd.f32 1e-05, %v794_v48  ;;  %v753_v19 = vmul.f32 %v2456_v15, %v2456_v15  ;;  %v754_v44 = vmul.f32 %v2460_v54, %v2460_v54  ;;  %v828_v62 = vmul.f32 %v1710_v46, %v827_v7 }
 0x157   : > { %1711 = vrsqrt.f32 %v800_v21  ;;  %v779_v9 = vrot.slane %v753_v19, 4  ;;  %v785_v57 = vrot.slane %v754_v44, 4  ;;  %v832_v43 = vsel %vm831_vm3, %v1710_v46, %v828_v62 }
 0x158   : > { %v865_v32 = vmul.f32 %v832_v43, %v2396_v33  ;;  %vm839_vm5 = vweird.f32 %v800_v21 }
 0x159   : > { %v780_v29 = vadd.f32 %v779_v9, %v753_v19  ;;  %v786_v42 = vadd.f32 %v785_v57, %v754_v44 }
 0x15a   : > { %v875_v24 = vmul.f32 %v2364_v39, %v865_v32 }
 0x15b   : > { %v781_v10 = vrot.slane %v780_v29, 2  ;;  %v787_v17 = vrot.slane %v786_v42, 2 }
 0x15c   : > { %v885_v2 = vadd.f32 %v2370_v5, %v875_v24 }
 0x15d   : > { %v1712_v53 = vpop.eup %1711  ;;  %v782_v49 = vadd.f32 %v781_v10, %v780_v29  ;;  %v788_v50 = vadd.f32 %v787_v17, %v786_v42 }
 0x15e   : > { %v834_v61 = vmul.f32 %v1712_v53, %v800_v21  ;;  %v891_v27 = vpack.c.bf16 %v885_v2, %v885_v2  ;;  %vm840_vm4 = vweird.f32 %v1712_v53 }
 0x15f   : > { %v783_v51 = vrot.slane %v782_v49, 1  ;;  %v789_v12 = vrot.slane %v788_v50, 1  ;;  %vm841_vm6 = vmor %vm839_vm5, %vm840_vm4 }
 0x160   : > { %v835_v45 = vmul.f32 %v1712_v53, %v834_v61  ;;  %v924_v52 = vsel %vm916_vm12, %v891_v27, 0 }
 0x161   : > { %v784_v60 = vadd.f32 %v783_v51, %v782_v49  ;;  %v790_v33 = vadd.f32 %v789_v12, %v788_v50  ;;  %980 = vmatpush.bf16.msra.mxu2 %v924_v52 }
 0x162   : > { %v836_v6 = vmul.f32 0.5, %v835_v45 }
 0x163   : > { %v795_v11 = vmul.f32 0.14285715, %v784_v60  ;;  %v796_v25 = vmul.f32 0.14285715, %v790_v33 }
 0x164   : > { %v837_v31 = vsub.f32 1.5, %v836_v6  ;;  %1599 = vmatmul.msk.bf16.vlgmr.msra.gmra.mxu2 %vm909_vm14, %v2404_v23 }
 0x165   : > { %v801_v18 = vadd.f32 1e-05, %v795_v11  ;;  %v802_v47 = vadd.f32 1e-05, %v796_v25 }
 0x166   : > { %v838_v34 = vmul.f32 %v1712_v53, %v837_v31 }
 0x167   : > { %1713 = vrsqrt.f32 %v801_v18  ;;  %vm849_vm9 = vweird.f32 %v801_v18  ;;  %vm859_vm11 = vweird.f32 %v802_v47 }
 0x168   : > { %v842_v56 = vsel %vm841_vm6, %v1712_v53, %v838_v34  ;;  %1715 = vrsqrt.f32 %v802_v47 }
 0x169   : > { %v866_v36 = vmul.f32 %v842_v56, %v2443_v63 }
 0x16b   : > { %v876_v14 = vmul.f32 %v2364_v39, %v866_v36 }
 0x16d   : > { %v1714_v26 = vpop.eup %1713  ;;  %v886_v20 = vadd.f32 %v2370_v5, %v876_v14 }
 0x16e   : > { %v1716_v55 = vpop.eup %1715  ;;  %v844_v16 = vmul.f32 %v1714_v26, %v801_v18  ;;  %vm850_vm7 = vweird.f32 %v1714_v26 }
 0x16f   : > { %v892_v3 = vpack.c.bf16 %v886_v20, %v886_v20  ;;  %v854_v41 = vmul.f32 %v1716_v55, %v802_v47  ;;  %vm860_vm8 = vweird.f32 %v1716_v55  ;;  %vm851_vm10 = vmor %vm849_vm9, %vm850_vm7 }
 0x170   : > { %v845_v40 = vmul.f32 %v1714_v26, %v844_v16  ;;  %vm861_vm13 = vmor %vm859_vm11, %vm860_vm8 }
 0x171   : > { %v927_v37 = vsel %vm916_vm12, %v892_v3, 0  ;;  %v855_v8 = vmul.f32 %v1716_v55, %v854_v41 }
 0x172   : > { %999 = vmatpush.bf16.msra.mxu3 %v927_v37  ;;  %v846_v28 = vmul.f32 0.5, %v845_v40 }
 0x173   : > { %v856_v46 = vmul.f32 0.5, %v855_v8 }
 0x174   : > { %v847_v38 = vsub.f32 1.5, %v846_v28  ;;  %1600 = vmatmul.msk.bf16.gmra.mxu2 %vm909_vm14, %v2448_v0 }
 0x175   : > { %1601 = vmatmul.msk.bf16.vlgmr.msra.gmra.mxu3 %vm909_vm14, %v2404_v23  ;;  %v857_v63 = vsub.f32 1.5, %v856_v46 }
 0x176   : > { %v848_v13 = vmul.f32 %v1714_v26, %v847_v38 }
 0x177   : > { %v858_v4 = vmul.f32 %v1716_v55, %v857_v63 }
 0x178   : > { %v852_v1 = vsel %vm851_vm10, %v1714_v26, %v848_v13 }
 0x179   : > { %v867_v22 = vmul.f32 %v852_v1, %v2456_v15  ;;  %v862_v35 = vsel %vm861_vm13, %v1716_v55, %v858_v4 }
 0x17a   : > { %v868_v30 = vmul.f32 %v862_v35, %v2460_v54 }
 0x17b   : > { %v877_v58 = vmul.f32 %v2364_v39, %v867_v22 }
 0x17c   : > { %v878_v59 = vmul.f32 %v2364_v39, %v868_v30 }
 0x17d   : > { %v887_v48 = vadd.f32 %v2370_v5, %v877_v58 }
 0x17e   : > { %v888_v7 = vadd.f32 %v2370_v5, %v878_v59 }
 0x17f   : > { %v893_v21 = vpack.c.bf16 %v887_v48, %v887_v48 }
 0x180   : > { %v894_v19 = vpack.c.bf16 %v888_v7, %v888_v7 }
 0x181   : > { %v930_v44 = vsel %vm916_vm12, %v893_v21, 0 }
 0x182   : > { %1018 = vmatpush.bf16.msrb.mxu0 %v930_v44  ;;  %v933_v62 = vsel %vm916_vm12, %v894_v19, 0 }
 0x183   : > { %1037 = vmatpush.bf16.msrb.mxu1 %v933_v62 }
 0x185   : > { %1602 = vmatmul.msk.bf16.gmra.mxu3 %vm909_vm14, %v2448_v0  ;;  %1603 = vmatmul.msk.bf16.vlgmr.msrb.gmra.mxu0 %vm909_vm14, %v2404_v23 }
 0x186   : > { %1605 = vmatmul.msk.bf16.vlgmr.msrb.gmra.mxu1 %vm909_vm14, %v2404_v23 }
 0x195   : > { %1604 = vmatmul.msk.bf16.gmra.mxu0 %vm909_vm14, %v2448_v0 }
 0x196   : > { %1606 = vmatmul.msk.bf16.gmra.mxu1 %vm909_vm14, %v2448_v0 }
 0x1b2   : > { %v2498_v39 = vpop.f32.mrf.mxu0 }
 0x1ba   : > { %v2500_v5 = vpop.f32.mrf.mxu0 }
 0x1be   : > { %v2502_v15 = vpop.f32.mrf.mxu1 }
 0x1c2   : > { %v949_v54 = vpop.f32.mrf.mxu0 }
 0x1c3   : > { %v1607_v9 = vmul.f32 -1.442695, %v949_v54 }
 0x1c5   : > { %1717 = vpow2.f32 %v1607_v9 }
 0x1c6   : > { %v2504_v57 = vpop.f32.mrf.mxu1 }
 0x1ca   : > { %v951_v43 = vpop.f32.mrf.mxu0 }
 0x1cb   : > { %v1718_v29 = vpop.eup %1717  ;;  %v1613_v23 = vmul.f32 -1.442695, %v951_v43 }
 0x1cc   : > { %v1085_v32 = vadd.f32 1.0, %v1718_v29 }
 0x1cd   : > { %1719 = vpow2.f32 %v1613_v23 }
 0x1ce   : > { %1721 = vrcp.f32 %v1085_v32  ;;  %v2506_v42 = vpop.f32.mrf.mxu1  ;;  %vm1102_vm12 = vweird.f32 %v1085_v32  ;;  %v1106_v45 = vand.u32 2147483647, %v1085_v32  ;;  %v1108_v12 = vand.u32 2147483648, %v1085_v32 }
 0x1cf   : > { %v1608_v0 = vmul.f32 -1.442695, %v2506_v42 }
 0x1d0   : > { %vm1107_vm0 = vcmp.eq.f32.partialorder %v1106_v45, 8.507059e+37  ;;  %v1109_v11 = vor.u32 1.1754944e-38, %v1108_v12 }
 0x1d1   : > { %1723 = vpow2.f32 %v1608_v0 }
 0x1d3   : > { %v1720_v10 = vpop.eup %1719 }
 0x1d4   : > { %v1722_v24 = vpop.eup %1721  ;;  %v1091_v17 = vadd.f32 1.0, %v1720_v10 }
 0x1d5   : > { %v1098_v53 = vmul.f32 %v1722_v24, %v1085_v32  ;;  %vm1103_vm14 = vweird.f32 %v1722_v24 }
 0x1d6   : > { %1725 = vrcp.f32 %v1091_v17  ;;  %v2509_v49 = vpop.f32.mrf.mxu1  ;;  %vm2512_vm15 = vmor %vm1102_vm12, %vm1103_vm14  ;;  %vm1192_vm1 = vweird.f32 %v1091_v17  ;;  %v1198_v31 = vand.u32 2147483648, %v1091_v17  ;;  %v1196_v47 = vand.u32 2147483647, %v1091_v17 }
 0x1d7   : > { %v1724_v2 = vpop.eup %1723  ;;  %v1099_v61 = vsub.f32 1.0, %v1098_v53  ;;  %v1614_v50 = vmul.f32 -1.442695, %v2509_v49  ;;  %vm1308_vm12 = vcmask 130048  }
 0x1d8   : > { %v1086_v51 = vadd.f32 1.0, %v1724_v2  ;;  %v1199_v55 = vor.u32 1.1754944e-38, %v1198_v31  ;;  %vm1197_vm4 = vcmp.eq.f32.partialorder %v1196_v47, 8.507059e+37 }
 0x1d9   : > { %v1100_v27 = vmul.f32 %v1722_v24, %v1099_v61  ;;  %1727 = vpow2.f32 %v1614_v50 }
 0x1da   : > { %1729 = vrcp.f32 %v1086_v51  ;;  %vm1117_vm5 = vweird.f32 %v1086_v51  ;;  %v1121_v41 = vand.u32 2147483647, %v1086_v51  ;;  %v1123_v46 = vand.u32 2147483648, %v1086_v51 }
 0x1db   : > { %v1101_v60 = vadd.f32 %v1722_v24, %v1100_v27  ;;  %v2551_v27 = vld [vmem:[%s1910_s21] sm:$0xf] }
 0x1dc   : > { %v1726_v52 = vpop.eup %1725  ;;  %vm1122_vm8 = vcmp.eq.f32.partialorder %v1121_v41, 8.507059e+37  ;;  %v1124_v58 = vor.u32 1.1754944e-38, %v1123_v46 }
 0x1dd   : > { %v1188_v33 = vmul.f32 %v1726_v52, %v1091_v17  ;;  %v1105_v18 = vsel %vm2512_vm15, %v1722_v24, %v1101_v60  ;;  %vm1193_vm2 = vweird.f32 %v1726_v52 }
 0x1de   : > { %v1110_v20 = vsel %vm1107_vm0, %v1109_v11, %v1105_v18  ;;  %vm1194_vm3 = vmor %vm1192_vm1, %vm1193_vm2 }
 0x1df   : > { %v1728_v25 = vpop.eup %1727  ;;  %v1189_v34 = vsub.f32 1.0, %v1188_v33  ;;  %v1277_v40 = vmul.f32 %v1110_v20, %v949_v54 }
 0x1e0   : > { %v1730_v56 = vpop.eup %1729  ;;  %v1092_v36 = vadd.f32 1.0, %v1728_v25 }
 0x1e1   : > { %v1190_v14 = vmul.f32 %v1726_v52, %v1189_v34  ;;  %v1113_v26 = vmul.f32 %v1730_v56, %v1086_v51  ;;  %vm1118_vm6 = vweird.f32 %v1730_v56  ;;  %v1289_v35 = vmul.f32 %v1277_v40, %v2498_v39 }
 0x1e2   : > { %1731 = vrcp.f32 %v1092_v36  ;;  %vm2520_vm7 = vmor %vm1117_vm5, %vm1118_vm6  ;;  %vm1207_vm9 = vweird.f32 %v1092_v36  ;;  %v1211_v59 = vand.u32 2147483647, %v1092_v36  ;;  %v1213_v48 = vand.u32 2147483648, %v1092_v36 }
 0x1e3   : > { %v1191_v16 = vadd.f32 %v1726_v52, %v1190_v14  ;;  %v1114_v3 = vsub.f32 1.0, %v1113_v26 }
 0x1e4   : > { %v1214_v54 = vor.u32 1.1754944e-38, %v1213_v48  ;;  %vm1212_vm13 = vcmp.eq.f32.partialorder %v1211_v59, 8.507059e+37 }
 0x1e5   : > { %v1195_v37 = vsel %vm1194_vm3, %v1726_v52, %v1191_v16  ;;  %v1115_v8 = vmul.f32 %v1730_v56, %v1114_v3 }
 0x1e6   : > { %v1200_v28 = vsel %vm1197_vm4, %v1199_v55, %v1195_v37 }
 0x1e7   : > { %v2518_v38 = vpop.f32.mrf.mxu2  ;;  %v1283_v63 = vmul.f32 %v1200_v28, %v951_v43  ;;  %v1116_v13 = vadd.f32 %v1730_v56, %v1115_v8 }
 0x1e8   : > { %v1732_v4 = vpop.eup %1731 }
 0x1e9   : > { %v1203_v22 = vmul.f32 %v1732_v4, %v1092_v36  ;;  %v1295_v30 = vmul.f32 %v1283_v63, %v2500_v5  ;;  %v1120_v7 = vsel %vm2520_vm7, %v1730_v56, %v1116_v13  ;;  %vm1208_vm10 = vweird.f32 %v1732_v4 }
 0x1ea   : > { %v1125_v62 = vsel %vm1122_vm8, %v1124_v58, %v1120_v7  ;;  %vm1209_vm11 = vmor %vm1207_vm9, %vm1208_vm10 }
 0x1eb   : > { %v1204_v21 = vsub.f32 1.0, %v1203_v22  ;;  %v1301_v19 = vpack.c.bf16 %v1295_v30, %v1289_v35  ;;  %v1278_v5 = vmul.f32 %v1125_v62, %v2506_v42 }
 0x1ed   : > { %v1205_v44 = vmul.f32 %v1732_v4, %v1204_v21  ;;  %1319 = vmatpush.bf16.msrb.mxu2 %v1301_v19  ;;  %v1290_v32 = vmul.f32 %v1278_v5, %v2502_v15 }
 0x1ef   : > { %v2528_v9 = vpop.f32.mrf.mxu2  ;;  %v1206_v39 = vadd.f32 %v1732_v4, %v1205_v44 }
 0x1f0   : > { %1619 = vmatmul.msk.bf16.vlgmr.msrb.gmra.mxu2 %vm1308_vm12, %v2551_v27 }
 0x1f1   : > { %v1210_v43 = vsel %vm1209_vm11, %v1732_v4, %v1206_v39 }
 0x1f2   : > { %v1215_v29 = vsel %vm1212_vm13, %v1214_v54, %v1210_v43 }
 0x1f3   : > { %v1284_v23 = vmul.f32 %v1215_v29, %v2509_v49 }
 0x1f5   : > { %v1296_v0 = vmul.f32 %v1284_v23, %v2504_v57 }
 0x1f7   : > { %v2536_v24 = vpop.f32.mrf.mxu2  ;;  %v1302_v17 = vpack.c.bf16 %v1296_v0, %v1290_v32 }
 0x1f8   : > { %v2534_v10 = vpop.f32.mrf.mxu3  ;;  %v1609_v53 = vmul.f32 -1.442695, %v2536_v24 }
 0x1f9   : > { %1332 = vmatpush.bf16.msrb.mxu3 %v1302_v17 }
 0x1fa   : > { %1733 = vpow2.f32 %v1609_v53 }
 0x1fc   : > { %1620 = vmatmul.msk.bf16.vlgmr.msrb.gmra.mxu3 %vm1308_vm12, %v2551_v27 }
 0x1ff   : > { %v2541_v42 = vpop.f32.mrf.mxu2 }
 0x200   : > { %v2539_v2 = vpop.f32.mrf.mxu3  ;;  %v1734_v61 = vpop.eup %1733  ;;  %v1615_v49 = vmul.f32 -1.442695, %v2541_v42 }
 0x201   : > { %v1087_v57 = vadd.f32 1.0, %v1734_v61 }
 0x202   : > { %v2544_v15 = vpop.f32.mrf.mxu0  ;;  %1735 = vpow2.f32 %v1615_v49 }
 0x203   : > { %v2546_v50 = vpop.f32.mrf.mxu1  ;;  %1737 = vrcp.f32 %v1087_v57  ;;  %vm1132_vm14 = vweird.f32 %v1087_v57  ;;  %v1136_v18 = vand.u32 2147483647, %v1087_v57  ;;  %v1138_v34 = vand.u32 2147483648, %v1087_v57 }
 0x205   : > { %vm1137_vm1 = vcmp.eq.f32.partialorder %v1136_v18, 8.507059e+37  ;;  %v1139_v40 = vor.u32 1.1754944e-38, %v1138_v34 }
 0x208   : > { %v2548_v51 = vpop.f32.mrf.mxu3  ;;  %v1736_v12 = vpop.eup %1735 }
 0x209   : > { %v1610_v45 = vmul.f32 -1.442695, %v2548_v51  ;;  %v1738_v52 = vpop.eup %1737  ;;  %v1093_v6 = vadd.f32 1.0, %v1736_v12 }
 0x20a   : > { %v2558_v60 = vpop.f32.mrf.mxu0  ;;  %v1128_v11 = vmul.f32 %v1738_v52, %v1087_v57  ;;  %vm1133_vm15 = vweird.f32 %v1738_v52 }
 0x20b   : > { %1739 = vpow2.f32 %v1610_v45  ;;  %v2560_v33 = vpop.f32.mrf.mxu1  ;;  %vm2565_vm0 = vmor %vm1132_vm14, %vm1133_vm15  ;;  %vm1222_vm2 = vweird.f32 %v1093_v6  ;;  %v1226_v28 = vand.u32 2147483647, %v1093_v6  ;;  %v1228_v46 = vand.u32 2147483648, %v1093_v6 }
 0x20c   : > { %1741 = vrcp.f32 %v1093_v6  ;;  %v1129_v31 = vsub.f32 1.0, %v1128_v11 }
 0x20d   : > { %v1229_v35 = vor.u32 1.1754944e-38, %v1228_v46  ;;  %vm1227_vm5 = vcmp.eq.f32.partialorder %v1226_v28, 8.507059e+37 }
 0x20e   : > { %v1130_v25 = vmul.f32 %v1738_v52, %v1129_v31 }
 0x210   : > { %v2562_v47 = vpop.f32.mrf.mxu3  ;;  %v1131_v14 = vadd.f32 %v1738_v52, %v1130_v25 }
 0x211   : > { %v1740_v56 = vpop.eup %1739  ;;  %v1616_v36 = vmul.f32 -1.442695, %v2562_v47 }
 0x212   : > { %v2569_v20 = vadd.f32 1.0, %v1740_v56  ;;  %v2571_v55 = vpop.f32.mrf.mxu0  ;;  %v1742_v16 = vpop.eup %1741  ;;  %v1135_v8 = vsel %vm2565_vm0, %v1738_v52, %v1131_v14 }
 0x213   : > { %1743 = vpow2.f32 %v1616_v36  ;;  %v1611_v3 = vmul.f32 -1.442695, %v2571_v55  ;;  %v2574_v41 = vpop.f32.mrf.mxu1  ;;  %v1218_v37 = vmul.f32 %v1742_v16, %v1093_v6  ;;  %vm1223_vm3 = vweird.f32 %v1742_v16 }
 0x214   : > { %1745 = vrcp.f32 %v2569_v20  ;;  %v1612_v13 = vmul.f32 -1.442695, %v2574_v41  ;;  %v1140_v22 = vsel %vm1137_vm1, %v1139_v40, %v1135_v8  ;;  %vm1224_vm4 = vmor %vm1222_vm2, %vm1223_vm3  ;;  %v1151_v45 = vand.u32 2147483647, %v2569_v20 }
 0x215   : > { %v1219_v63 = vsub.f32 1.0, %v1218_v37  ;;  %1747 = vpow2.f32 %v1611_v3  ;;  %v1279_v62 = vmul.f32 %v1140_v22, %v2536_v24  ;;  %vm1147_vm7 = vweird.f32 %v2569_v20 }
 0x216   : > { %1749 = vpow2.f32 %v1612_v13  ;;  %vm1152_vm9 = vcmp.eq.f32.partialorder %v1151_v45, 8.507059e+37 }
 0x217   : > { %v1220_v4 = vmul.f32 %v1742_v16, %v1219_v63  ;;  %v1291_v17 = vmul.f32 %v1279_v62, %v2518_v38 }
 0x219   : > { %v1744_v1 = vpop.eup %1743  ;;  %v1221_v58 = vadd.f32 %v1742_v16, %v1220_v4 }
 0x21a   : > { %v1746_v30 = vpop.eup %1745  ;;  %v1094_v59 = vadd.f32 1.0, %v1744_v1  ;;  %v2580_v48 = vpop.f32.mrf.mxu0 }
 0x21b   : > { %v1143_v7 = vmul.f32 %v1746_v30, %v2569_v20  ;;  %v1617_v21 = vmul.f32 -1.442695, %v2580_v48  ;;  %v2584_v19 = vpop.f32.mrf.mxu1  ;;  %v1748_v44 = vpop.eup %1747  ;;  %v1225_v54 = vsel %vm1224_vm4, %v1742_v16, %v1221_v58  ;;  %vm1148_vm6 = vweird.f32 %v1746_v30 }
 0x21c   : > { %1751 = vrcp.f32 %v1094_v59  ;;  %v1230_v39 = vsel %vm1227_vm5, %v1229_v35, %v1225_v54  ;;  %v2587_v43 = vadd.f32 1.0, %v1748_v44  ;;  %v1750_v29 = vpop.eup %1749  ;;  %v1618_v32 = vmul.f32 -1.442695, %v2584_v19  ;;  %vm2600_vm8 = vmor %vm1147_vm7, %vm1148_vm6 }
 0x21d   : > { %v1144_v5 = vsub.f32 1.0, %v1143_v7  ;;  %v1285_v23 = vmul.f32 %v1230_v39, %v2541_v42  ;;  %1753 = vpow2.f32 %v1617_v21  ;;  %v2594_v24 = vadd.f32 1.0, %v1750_v29 }
 0x21e   : > { %1755 = vrcp.f32 %v2587_v43  ;;  %v1153_v42 = vand.u32 2147483648, %v2569_v20  ;;  %v1243_v18 = vand.u32 2147483648, %v1094_v59  ;;  %v1241_v14 = vand.u32 2147483647, %v1094_v59 }
 0x21f   : > { %v1145_v0 = vmul.f32 %v1746_v30, %v1144_v5  ;;  %v1297_v53 = vmul.f32 %v1285_v23, %v2528_v9  ;;  %1757 = vpow2.f32 %v1618_v32  ;;  %vm1237_vm11 = vweird.f32 %v1094_v59 }
 0x220   : > { %1759 = vrcp.f32 %v2594_v24  ;;  %v1154_v25 = vor.u32 1.1754944e-38, %v1153_v42  ;;  %v1244_v8 = vor.u32 1.1754944e-38, %v1243_v18  ;;  %vm1242_vm14 = vcmp.eq.f32.partialorder %v1241_v14, 8.507059e+37 }
 0x221   : > { %v1146_v61 = vadd.f32 %v1746_v30, %v1145_v0  ;;  %v1303_v57 = vpack.c.bf16 %v1297_v53, %v1291_v17  ;;  %v1168_v22 = vand.u32 2147483648, %v2587_v43  ;;  %vm1162_vm0 = vweird.f32 %v2587_v43 }
 0x222   : > { %v1752_v49 = vpop.eup %1751  ;;  %v1181_v7 = vand.u32 2147483647, %v2594_v24  ;;  %vm1177_vm3 = vweird.f32 %v2594_v24 }
 0x223   : > { %v1233_v12 = vmul.f32 %v1752_v49, %v1094_v59  ;;  %v1754_v52 = vpop.eup %1753  ;;  %1345 = vmatpush.bf16.msra.mxu2 %v1303_v57  ;;  %v1150_v6 = vsel %vm2600_vm8, %v1746_v30, %v1146_v61  ;;  %vm1238_vm10 = vweird.f32 %v1752_v49  ;;  %v1166_v59 = vand.u32 2147483647, %v2587_v43 }
 0x224   : > { %v1756_v9 = vpop.eup %1755  ;;  %v2606_v31 = vadd.f32 1.0, %v1754_v52  ;;  %v1155_v20 = vsel %vm1152_vm9, %v1154_v25, %v1150_v6  ;;  %vm1239_vm13 = vmor %vm1237_vm11, %vm1238_vm10  ;;  %v1169_v5 = vor.u32 1.1754944e-38, %v1168_v22  ;;  %vm1182_vm7 = vcmp.eq.f32.partialorder %v1181_v7, 8.507059e+37  ;;  %v1768_v7 = vld [vmem:[%s1915_s27 + $0x18] sm:$0xff] }
 0x225   : > { %v1234_v11 = vsub.f32 1.0, %v1233_v12  ;;  %v1158_v34 = vmul.f32 %v1756_v9, %v2587_v43  ;;  %v1758_v56 = vpop.eup %1757  ;;  %v1280_v46 = vmul.f32 %v1155_v20, %v2548_v51  ;;  %vm1163_vm15 = vweird.f32 %v1756_v9 }
 0x226   : > { %1761 = vrcp.f32 %v2606_v31  ;;  %1621 = vmatmul.msk.bf16.vlgmr.msra.gmra.mxu2 %vm1308_vm12, %v2551_v27  ;;  %v1760_v26 = vpop.eup %1759  ;;  %v2612_v3 = vadd.f32 1.0, %v1758_v56  ;;  %vm2625_vm1 = vmor %vm1162_vm0, %vm1163_vm15  ;;  %v1183_v43 = vand.u32 2147483648, %v2594_v24  ;;  %vm1167_vm4 = vcmp.eq.f32.partialorder %v1166_v59, 8.507059e+37 }
 0x227   : > { %v1235_v36 = vmul.f32 %v1752_v49, %v1234_v11  ;;  %v1159_v16 = vsub.f32 1.0, %v1158_v34  ;;  %v1173_v37 = vmul.f32 %v1760_v26, %v2594_v24  ;;  %v1292_v21 = vmul.f32 %v1280_v46, %v2534_v10 }
 0x228   : > { %1763 = vrcp.f32 %v2612_v3  ;;  %vm1178_vm2 = vweird.f32 %v1760_v26  ;;  %v1258_v10 = vand.u32 2147483648, %v2606_v31  ;;  %v1256_v17 = vand.u32 2147483647, %v2606_v31 }
 0x229   : > { %v1236_v40 = vadd.f32 %v1752_v49, %v1235_v36  ;;  %v1160_v28 = vmul.f32 %v1756_v9, %v1159_v16  ;;  %v1174_v13 = vsub.f32 1.0, %v1173_v37  ;;  %vm2635_vm5 = vmor %vm1177_vm3, %vm1178_vm2  ;;  %v1184_v24 = vor.u32 1.1754944e-38, %v1183_v43  ;;  %v1766_v37 = vld [vmem:[%s1915_s27 + $0x8] sm:$0xff] }
 0x22a   : > { %vm1252_vm8 = vweird.f32 %v2606_v31  ;;  %v1273_v45 = vand.u32 2147483648, %v2612_v3  ;;  %v1259_v42 = vor.u32 1.1754944e-38, %v1258_v10  ;;  %v1271_v52 = vand.u32 2147483647, %v2612_v3 }
 0x22b   : > { %v1240_v63 = vsel %vm1239_vm13, %v1752_v49, %v1236_v40  ;;  %v1161_v1 = vadd.f32 %v1756_v9, %v1160_v28  ;;  %v1175_v58 = vmul.f32 %v1760_v26, %v1174_v13  ;;  %vm1257_vm11 = vcmp.eq.f32.partialorder %v1256_v17, 8.507059e+37 }
 0x22c   : > { %v1245_v4 = vsel %vm1242_vm14, %v1244_v8, %v1240_v63  ;;  %v1762_v35 = vpop.eup %1761  ;;  %vm1267_vm13 = vweird.f32 %v2612_v3  ;;  %v1274_v18 = vor.u32 1.1754944e-38, %v1273_v45  ;;  %vm1272_vm15 = vcmp.eq.f32.partialorder %v1271_v52, 8.507059e+37 }
 0x22d   : > { %v1286_v30 = vmul.f32 %v1245_v4, %v2562_v47  ;;  %v1248_v51 = vmul.f32 %v1762_v35, %v2606_v31  ;;  %v1176_v54 = vadd.f32 %v1760_v26, %v1175_v58  ;;  %v1165_v39 = vsel %vm2625_vm1, %v1756_v9, %v1161_v1  ;;  %v1767_v1 = vld [vmem:[%s1915_s27 + $0x10] sm:$0xff] }
 0x22e   : > { %v1764_v47 = vpop.eup %1763  ;;  %vm1253_vm6 = vweird.f32 %v1762_v35  ;;  %v1170_v53 = vsel %vm1167_vm4, %v1169_v5, %v1165_v39 }
 0x22f   : > { %v1298_v44 = vmul.f32 %v1286_v30, %v2539_v2  ;;  %v1249_v29 = vsub.f32 1.0, %v1248_v51  ;;  %v1263_v2 = vmul.f32 %v1764_v47, %v2612_v3  ;;  %v1180_v61 = vsel %vm2635_vm5, %v1760_v26, %v1176_v54  ;;  %vm1254_vm9 = vmor %vm1252_vm8, %vm1253_vm6  ;;  %v1769_v54 = vld [vmem:[%s1915_s27 + $0x20] sm:$0xff] }
 0x230   : > { %vm1268_vm10 = vweird.f32 %v1764_v47  ;;  %v1281_v38 = vmul.f32 %v1170_v53, %v2571_v55  ;;  %v1185_v9 = vsel %vm1182_vm7, %v1184_v24, %v1180_v61 }
 0x231   : > { %v1304_v23 = vpack.c.bf16 %v1298_v44, %v1292_v21  ;;  %v1250_v0 = vmul.f32 %v1762_v35, %v1249_v29  ;;  %v1264_v49 = vsub.f32 1.0, %v1263_v2  ;;  %vm1269_vm14 = vmor %vm1267_vm13, %vm1268_vm10  ;;  %v1282_v34 = vmul.f32 %v1185_v9, %v2574_v41 }
 0x232   : > { %v1293_v55 = vmul.f32 %v1281_v38, %v2544_v15  ;;  %v1396_v15 = vld [vmem:[%s2691_s1] sm:$0x3f] }
 0x233   : > { %1358 = vmatpush.bf16.msra.mxu3 %v1304_v23  ;;  %v1251_v57 = vadd.f32 %v1762_v35, %v1250_v0  ;;  %v1265_v12 = vmul.f32 %v1764_v47, %v1264_v49  ;;  %v1294_v16 = vmul.f32 %v1282_v34, %v2546_v50  ;;  %v1399_v50 = vperm.slane %v1396_v15, 1  ;;  %v1770_v23 = vld [vmem:[%s1915_s27 + $0x28] sm:$0xff] }
 0x234   : > { %v1400_v13 = vperm.slane %v1396_v15, 2  ;;  %v1401_v58 = vperm.slane %v1396_v15, 3  ;;  %v1402_v44 = vperm.slane %v1396_v15, 4  ;;  %v1403_v39 = vperm.slane %v1396_v15, 5 }
 0x235   : > { %v1255_v6 = vsel %vm1254_vm9, %v1762_v35, %v1251_v57  ;;  %v1266_v25 = vadd.f32 %v1764_v47, %v1265_v12 }
 0x236   : > { %1622 = vmatmul.msk.bf16.vlgmr.msra.gmra.mxu3 %vm1308_vm12, %v2551_v27  ;;  %v1260_v11 = vsel %vm1257_vm11, %v1259_v42, %v1255_v6 }
 0x237   : > { %v1287_v31 = vmul.f32 %v1260_v11, %v2580_v48  ;;  %v1270_v56 = vsel %vm1269_vm14, %v1764_v47, %v1266_v25 }
 0x238   : > { %v1275_v14 = vsel %vm1272_vm15, %v1274_v18, %v1270_v56 }
 0x239   : > { %v1299_v36 = vmul.f32 %v1287_v31, %v2558_v60  ;;  %v1288_v26 = vmul.f32 %v1275_v14, %v2584_v19  ;;  %v1398_v60 = vperm.slane %v1396_v15, 0  ;;  %v1765_v19 = vld [vmem:[%s1915_s27] sm:$0xff] }
 0x23b   : > { %v1305_v20 = vpack.c.bf16 %v1299_v36, %v1293_v55  ;;  %v1300_v48 = vmul.f32 %v1288_v26, %v2560_v33 }
 0x23d   : > { %1371 = vmatpush.bf16.msra.mxu0 %v1305_v20  ;;  %v1306_v3 = vpack.c.bf16 %v1300_v48, %v1294_v16 }
 0x23f   : > { %1384 = vmatpush.bf16.msra.mxu1 %v1306_v3 }
 0x240   : > { %1623 = vmatmul.msk.bf16.vlgmr.msra.gmra.mxu0 %vm1308_vm12, %v2551_v27 }
 0x242   : > { %1624 = vmatmul.msk.bf16.vlgmr.msra.gmra.mxu1 %vm1308_vm12, %v2551_v27 }
 0x273   : > { %v1321_v41 = vpop.f32.mrf.mxu2 }
 0x274   : > { %v1390_v40 = vadd.f32 %v1765_v19, %v1321_v41 }
 0x276   : > { %v1410_v28 = vmul.f32 %v1398_v60, %v1390_v40 }
 0x278   : > { %1416 = vst [vmem:[%s1915_s27] sm:$0xff] %v1410_v28 }
 0x27b   : > { %v1323_v27 = vpop.f32.mrf.mxu2 }
 0x27f   : > { %v1334_v33 = vpop.f32.mrf.mxu3 }
 0x280   : > { %v1391_v8 = vadd.f32 %v1766_v37, %v1334_v33 }
 0x282   : > { %v1411_v46 = vmul.f32 %v1399_v50, %v1391_v8 }
 0x284   : > { %1417 = vst [vmem:[%s1915_s27 + $0x8] sm:$0xff] %v1411_v46 }
 0x287   : > { %v1336_v63 = vpop.f32.mrf.mxu3 }
 0x2a9   : > { %v1347_v4 = vpop.f32.mrf.mxu2 }
 0x2aa   : > { %v1392_v22 = vadd.f32 %v1767_v1, %v1347_v4 }
 0x2ac   : > { %v1412_v35 = vmul.f32 %v1400_v13, %v1392_v22 }
 0x2ae   : > { %1418 = vst [vmem:[%s1915_s27 + $0x10] sm:$0xff] %v1412_v35 }
 0x2b1   : > { %v1349_v30 = vpop.f32.mrf.mxu2 }
 0x2b9   : > { %v1360_v59 = vpop.f32.mrf.mxu3 }
 0x2ba   : > { %v1393_v51 = vadd.f32 %v1768_v7, %v1360_v59 }
 0x2bc   : > { %v1413_v21 = vmul.f32 %v1401_v58, %v1393_v51 }
 0x2bd   : > { %v1373_v62 = vpop.f32.mrf.mxu0 }
 0x2be   : > { %1419 = vst [vmem:[%s1915_s27 + $0x18] sm:$0xff] %v1413_v21  ;;  %v1394_v47 = vadd.f32 %v1769_v54, %v1373_v62 }
 0x2bf   : > { %v1386_v43 = vpop.f32.mrf.mxu1 }
 0x2c0   : > { %v1414_v5 = vmul.f32 %v1402_v44, %v1394_v47  ;;  %v1395_v10 = vadd.f32 %v1770_v23, %v1386_v43 }
 0x2c1   : > { %v1362_v29 = vpop.f32.mrf.mxu3 }
 0x2c2   : > { %1420 = vst [vmem:[%s1915_s27 + $0x20] sm:$0xff] %v1414_v5  ;;  %v1415_v2 = vmul.f32 %v1403_v39, %v1395_v10 }
 0x2c4   : > { %1421 = vst [vmem:[%s1915_s27 + $0x28] sm:$0xff] %v1415_v2 }
 0x2c5   : > { %v1375_v32 = vpop.f32.mrf.mxu0 }
 0x2c7   : > { %v1388_v0 = vpop.f32.mrf.mxu1 }
 0x2c8 PF: > { %s15_s22 = sadd.s32 1, %s1809_s22   ;;  %s2712_s19 = sld [smem:[#allocation2_spill]] }
 0x2c9   : > { %p12_p8 = scmp.ge.s32.totalorder %s15_s22, 10   ;;  %s2713_s9 = sld [smem:[#allocation3_spill]] }
 0x2ca   : > { %s2714_s21 = sld [smem:[#allocation4_spill]]  ;;  %s2715_s18 = smov %s1801_s20 }
 0x2cb   :  { %14 = sbr.rel (!%p12_p8) target bundleno = 3 (0x3), region = 83 }
 0x2cf   : > { %s2716_s20 = smov %s2713_s9 }

// kernel: freq_cond_stage.3
= control target key start
LH: loop header
LB: loop body
LE: loop exit
PB: predicated region body
PF: predicated region fallthrough
CT: control target
= control target key end

     0   :  { %s887_s21 = smov 0   ;;  %s889_s22 = smov 0   ;;  %s952_s0 = inlined_call_operand.vmem [shape: bf16[4,8,128], index: 0, kind: input, shape index: {}]   ;;  %s953_s1 = inlined_call_operand.vmem [shape: bf16[4,8,128], index: 1, kind: input, shape index: {}]   ;;  %s954_s2 = inlined_call_operand.vmem [shape: bf16[4,8,128], index: 2, kind: input, shape index: {}]   ;;  %s955_s3 = inlined_call_operand.vmem [shape: bf16[4,8,128], index: 3, kind: input, shape index: {}]   ;;  %s956_s4 = inlined_call_operand.vmem [shape: bf16[4,4,16,8], index: 4, kind: input, shape index: {}]   ;;  %s957_s5 = inlined_call_operand.vmem [shape: f32[4,16,2], index: 5, kind: input, shape index: {}]   ;;  %s958_s6 = inlined_call_operand.vmem [shape: f32[4,16,128], index: 6, kind: output, shape index: {}]  }
   0x1   :  { %s891_s23 = smov 0  }
   0x2 LB: > { %s28_s24 = sadd.s32 1, %s843_s22  ;;  %p745_p0 = scmp.ge.s32.totalorder %s847_s23, 1  ;;  %s847_s23 = sphi %s891_s23, %s16_s23   ;;  %s843_s22 = sphi %s889_s22, %s960_s22   ;;  %s839_s21 = sphi %s887_s21, %s959_s21  }
   0x3   : > { %p30_p1 = scmp.ge.s32.totalorder %s28_s24, 4  ;;  %p292_p2 = scmp.lt.s32.totalorder %s847_s23, 5 }
   0x5   : > { %s962_s24 = smov (%p30_p1, %s28_s24), 0  ;;  %p293_p3 = pnand %p745_p0, %p292_p2 }
   0x6   : > { %p358_p4 = scmp.lt.s32.totalorder (!%p293_p3), %s839_s21, 3 }
   0x7   : > { %296 = sbr.rel (%p293_p3) target bundleno = 230 (0xe6), region = 44 }
   0xc   : > { %v849_v0 = vmov 0   ;;  %v850_v1 = vmov 1   ;;  %s964_s21 = smov (!%p358_p4, %s839_s21), 3  ;;  %vm421_vm0 = vcmask 1043456   ;;  %vm417_vm1 = vcmask 64512  }
   0xd   : > { %818 = vset.pattern.permute.xlu0 %v849_v0  ;;  %819 = vset.pattern.permute.xlu1 %v850_v1  ;;  %s746_s25 = sshll.u32 %s964_s21, 2  ;;  %s784_s26 = sshll.u32 %s964_s21, 5  ;;  %v851_v18 = vmov 16.0  }
   0xe   : > { %s371_s29 = scalar_lea.vmem %s953_s1, %s746_s25  ;;  %s390_s8 = scalar_lea.vmem %s956_s4, %s784_s26  ;;  %821 = vrcp.f32 %v851_v18 }
   0xf   : > { %v411_v2 = vld [vmem:[%s371_s29] sm:$0xf]  ;;  %s364_s11 = scalar_lea.vmem %s952_s0, %s746_s25  ;;  %s378_s14 = scalar_lea.vmem %s954_s2, %s746_s25  ;;  %v788_v3 = vld [vmem:[%s390_s8 + $0x8] sm:$0xff]  ;;  %v789_v11 = vld [vmem:[%s390_s8 + $0x10] sm:$0xff] }
  0x10   : > { %v423_v4 = vsel %vm421_vm0, %v411_v2, 0  ;;  %v407_v5 = vld [vmem:[%s364_s11] sm:$0xf]  ;;  %s385_s17 = scalar_lea.vmem %s955_s3, %s746_s25  ;;  %s785_s18 = sshll.u32 %s964_s21, 4  ;;  %v790_v13 = vld [vmem:[%s390_s8 + $0x18] sm:$0xff] }
  0x11   : > { %v467_v6 = vld [vmem:[%s378_s14] sm:$0xf]  ;;  %432 = vmatpush.bf16.msra.mxu0 %v423_v4  ;;  %v448_v8 = vsel %vm421_vm0, %v407_v5, 0  ;;  %s395_s26 = scalar_lea.vmem %s957_s5, %s785_s18  ;;  %s403_s28 = scalar_lea.vmem %s958_s6, %s785_s18 }
  0x12   : > { %v787_v7 = vld [vmem:[%s390_s8] sm:$0xff]  ;;  %v477_v9 = vsel %vm421_vm0, %v467_v6, 0  ;;  %457 = vmatpush.bf16.msra.mxu1 %v448_v8  ;;  %v554_v15 = vld [vmem:[%s395_s26 + $0x8] sm:$0xff] }
  0x13   : > { %v498_v10 = vld [vmem:[%s385_s17] sm:$0xf]  ;;  %486 = vmatpush.bf16.msra.mxu2 %v477_v9 }
  0x14   : > { %v508_v12 = vsel %vm421_vm0, %v498_v10, 0  ;;  %v553_v14 = vld [vmem:[%s395_s26] sm:$0xff]  ;;  %762 = vmatmul.msk.bf16.vlgmr.msra.gmra.mxu0 %vm417_vm1, %v788_v3  ;;  %v822_v24 = vpop.eup %821 }
  0x15   : > { %517 = vmatpush.bf16.msra.mxu3 %v508_v12  ;;  %570 = vperm.xlu0 %818, %v553_v14   ;;  %v534_v28 = vmul.f32 16.0, %v822_v24  ;;  %vm538_vm2 = vweird.f32 %v822_v24 }
  0x16   : > { %767 = vmatmul.msk.bf16.vlgmr.msra.gmra.mxu1 %vm417_vm1, %v787_v7  ;;  %774 = vmatmul.msk.bf16.vlgmr.msra.gmra.mxu2 %vm417_vm1, %v789_v11 }
  0x17   : > { %581 = vperm.xlu1 %819, %v553_v14   ;;  %v535_v33 = vsub.f32 1.0, %v534_v28 }
  0x18   : > { %781 = vmatmul.msk.bf16.vlgmr.msra.gmra.mxu3 %vm417_vm1, %v790_v13 }
  0x19   : > { %v536_v36 = vmul.f32 %v822_v24, %v535_v33 }
  0x1b   : > { %v537_v39 = vadd.f32 %v822_v24, %v536_v36 }
  0x1d   : > { %575 = vperm.xlu0 %818, %v554_v15   ;;  %v539_v42 = vsel %vm538_vm2, %v822_v24, %v537_v39 }
  0x1f   : > { %585 = vperm.xlu1 %819, %v554_v15  }
  0x25   : > { %820 = vset.pattern.permute.xlu0 %v850_v1 }
  0x87   : > { %v571_v60 = vpop.permute.xlu0 %570 }
  0x89   : > { %v582_v63 = vpop.permute.xlu1 %581 }
  0x8f   : > { %v576_v5 = vpop.permute.xlu0 %575 }
  0x91   : > { %v434_v16 = vpop.f32.mrf.mxu0  ;;  %v586_v8 = vpop.permute.xlu1 %585 }
  0x93   : > { %v459_v17 = vpop.f32.mrf.mxu1 }
  0x94   : > { %v460_v21 = vadd.f32 %v459_v17, %v434_v16 }
  0x99   : > { %v488_v19 = vpop.f32.mrf.mxu2  ;;  %v436_v22 = vpop.f32.mrf.mxu0 }
  0x9a   : > { %v493_v25 = vadd.f32 %v488_v19, %v460_v21 }
  0x9b   : > { %v519_v20 = vpop.f32.mrf.mxu3  ;;  %v461_v23 = vpop.f32.mrf.mxu1 }
  0x9c   : > { %v462_v26 = vadd.f32 %v461_v23, %v436_v22  ;;  %v524_v31 = vadd.f32 %v519_v20, %v493_v25 }
  0xa1   : > { %v490_v27 = vpop.f32.mrf.mxu2 }
  0xa2   : > { %v494_v29 = vadd.f32 %v490_v27, %v462_v26 }
  0xa3   : > { %v521_v30 = vpop.f32.mrf.mxu3 }
  0xa4   : > { %v525_v32 = vadd.f32 %v521_v30, %v494_v29 }
  0xa6   : > { %v526_v34 = vadd.f32 %v525_v32, %v524_v31 }
  0xa8   : > { %v527_v35 = vrot.slane %v526_v34, 4 }
  0xaa   : > { %v528_v37 = vadd.f32 %v527_v35, %v526_v34 }
  0xac   : > { %v529_v38 = vrot.slane %v528_v37, 2 }
  0xae   : > { %v530_v40 = vadd.f32 %v529_v38, %v528_v37 }
  0xb0   : > { %v531_v41 = vrot.slane %v530_v40, 1 }
  0xb2   : > { %v532_v43 = vadd.f32 %v531_v41, %v530_v40 }
  0xb4   : > { %v540_v44 = vmul.f32 %v539_v42, %v532_v43 }
  0xb6   : > { %v542_v45 = vsub.f32 %v525_v32, %v540_v44  ;;  %v541_v46 = vsub.f32 %v524_v31, %v540_v44 }
  0xb8   : > { %v544_v47 = vmul.f32 %v542_v45, %v542_v45  ;;  %v543_v48 = vmul.f32 %v541_v46, %v541_v46 }
  0xba   : > { %v545_v49 = vadd.f32 %v544_v47, %v543_v48 }
  0xbc   : > { %v546_v50 = vrot.slane %v545_v49, 4 }
  0xbe   : > { %v547_v51 = vadd.f32 %v546_v50, %v545_v49 }
  0xc0   : > { %v548_v52 = vrot.slane %v547_v51, 2 }
  0xc2   : > { %v549_v53 = vadd.f32 %v548_v52, %v547_v51 }
  0xc4   : > { %v550_v54 = vrot.slane %v549_v53, 1 }
  0xc6   : > { %v551_v55 = vadd.f32 %v550_v54, %v549_v53 }
  0xc8   : > { %v552_v56 = vmul.f32 0.06666667, %v551_v55 }
  0xca   : > { %v555_v57 = vadd.f32 1e-05, %v552_v56 }
  0xcc   : > { %823 = vrsqrt.f32 %v555_v57  ;;  %vm562_vm4 = vweird.f32 %v555_v57 }
  0xd2   : > { %v824_v58 = vpop.eup %823 }
  0xd3   : > { %v557_v59 = vmul.f32 %v824_v58, %v555_v57  ;;  %vm563_vm3 = vweird.f32 %v824_v58 }
  0xd4   : > { %vm564_vm5 = vmor %vm562_vm4, %vm563_vm3 }
  0xd5   : > { %v558_v61 = vmul.f32 %v824_v58, %v557_v59 }
  0xd7   : > { %v559_v62 = vmul.f32 0.5, %v558_v61 }
  0xd9   : > { %v560_v0 = vsub.f32 1.5, %v559_v62 }
  0xdb   : > { %v561_v1 = vmul.f32 %v824_v58, %v560_v0 }
  0xdd   : > { %v565_v2 = vsel %vm564_vm5, %v824_v58, %v561_v1 }
  0xde   : > { %v566_v3 = vmul.f32 %v565_v2, %v541_v46  ;;  %v567_v4 = vmul.f32 %v565_v2, %v542_v45 }
  0xe0   : > { %v578_v6 = vmul.f32 %v571_v60, %v566_v3  ;;  %v579_v7 = vmul.f32 %v576_v5, %v567_v4 }
  0xe2   : > { %v588_v9 = vadd.f32 %v582_v63, %v578_v6  ;;  %v589_v10 = vadd.f32 %v586_v8, %v579_v7 }
  0xe4   : > { %590 = vst [vmem:[%s403_s28] sm:$0xff] %v588_v9 }
  0xe5   : > { %591 = vst [vmem:[%s403_s28 + $0x8] sm:$0xff] %v589_v10 }
  0xe6 PF: > { %s16_s23 = sadd.s32 1, %s847_s23   ;;  %s959_s21 = smov %s843_s22 }
  0xe7   : > { %p13_p5 = scmp.ge.s32.totalorder %s16_s23, 6   ;;  %s960_s22 = smov %s962_s24 }
  0xe9   :  { %15 = sbr.rel (!%p13_p5) target bundleno = 2 (0x2), region = 92 }

</bundles_post_ra>
